<compile_context>
chip_gen: v7x
topology: tpu7x:2x2x1
jax: 0.10.0
libtpu: 0.0.40
codegen_flags: <defaults>
</compile_context>

<pallas_src>
import functools
import math

import jax
import jax.numpy as jnp
from jax import lax
from jax.experimental import pallas as pl
from jax.experimental.pallas import tpu as pltpu


# ---------------------------------------------------------------------------
# Per-TensorCore VMEM budget (never pin the full 64 MiB on v7x).
# ---------------------------------------------------------------------------
@functools.lru_cache(maxsize=None)
def _vmem_limit_bytes():
    try:
        cap = int(pltpu.get_tpu_info().vmem_capacity_bytes)
    except Exception:
        return None                                   # keep the compiler default
    return min(int(cap * 0.85), 112 * 1024 * 1024)    # ~54 MiB v7x, ~108 MiB v5e/v6e


def _compiler_params():
    return pltpu.CompilerParams(
        dimension_semantics=("parallel",),            # batch axis -> both v7x TCs
        vmem_limit_bytes=_vmem_limit_bytes(),
    )


def _const_spec(block_shape, index_map):
    """BlockSpec for weights whose block index never changes: single-buffered."""
    try:
        return pl.BlockSpec(block_shape, index_map, pipeline_mode=pl.Buffered(1))
    except (TypeError, AttributeError):
        return pl.BlockSpec(block_shape, index_map)


# ---------------------------------------------------------------------------
# Pallas kernel 1: conv0[0]  (stride-2 3x3 conv + PReLU)
#   expressed as a stride-1 2x2 conv over the space-to-depth input:
#   4 shifted-window matmuls, f32 accumulation, bf16 residents.
# ---------------------------------------------------------------------------
def _conv0a_kernel(x_ref, w_ref, ba_ref, o_ref, pad_ref, *, H1, W1, C4, Ch):
    P = H1 * W1
    # zero only the top/left halo (interior is fully overwritten just below).
    pad_ref[0:1, :, :] = jnp.zeros((1, W1 + 1, C4), jnp.bfloat16)
    pad_ref[:, 0:1, :] = jnp.zeros((H1 + 1, 1, C4), jnp.bfloat16)
    pad_ref[1:H1 + 1, 1:W1 + 1, :] = x_ref[0]
    xp = pad_ref[...]

    acc = None
    for t in range(4):                                # shifted-window matmuls (no im2col)
        a, b = divmod(t, 2)
        win = xp[a:a + H1, b:b + W1, :].reshape(P, C4)
        d = jnp.dot(win, w_ref[t], preferred_element_type=jnp.float32)
        acc = d if acc is None else acc + d

    z = acc + ba_ref[0:1, :]
    z = jnp.where(z >= 0.0, z, ba_ref[1:2, :] * z)     # per-channel PReLU
    o_ref[0] = z.reshape(H1, W1, Ch).astype(o_ref.dtype)


def conv0_stage_a(s2dx, w00, ba00):
    N, H1, W1, C4 = s2dx.shape
    Ch = w00.shape[2]
    kernel = functools.partial(_conv0a_kernel, H1=H1, W1=W1, C4=C4, Ch=Ch)
    return pl.pallas_call(
        kernel,
        out_shape=jax.ShapeDtypeStruct((N, H1, W1, Ch), jnp.bfloat16),
        grid=(N,),
        in_specs=[
            pl.BlockSpec((1, H1, W1, C4), lambda n: (n, 0, 0, 0)),
            _const_spec((4, C4, Ch), lambda n: (0, 0, 0)),
            _const_spec((2, Ch), lambda n: (0, 0)),
        ],
        out_specs=pl.BlockSpec((1, H1, W1, Ch), lambda n: (n, 0, 0, 0)),
        scratch_shapes=[pltpu.VMEM((H1 + 1, W1 + 1, C4), jnp.bfloat16)],
        compiler_params=_compiler_params(),
    )(s2dx, w00, ba00)


# ---------------------------------------------------------------------------
# Pallas kernel 2: fused trunk
#   conv0[1] (2x2 over s2d) + 8x(3x3 conv + PReLU) + residual + lastconv (sub-pixel
#   packed), everything VMEM-resident, shifted-window matmuls, bf16 residents,
#   lane-dense (20, Hq*Wq) output.
# ---------------------------------------------------------------------------
def _trunk_kernel(s2d_ref, w01_ref, ba01_ref, wcb_ref, bacb_ref, wlast_ref, blast_ref,
                  o_ref, s2dpad_ref, featpad_ref, *, Hq, Wq, C, C4h):
    Pq = Hq * Wq

    def bias_prelu(z, ba):                             # z: (Pq, cout) f32, ba: (2, cout)
        z = z + ba[0:1, :]
        return jnp.where(z >= 0.0, z, ba[1:2, :] * z)

    def conv3x3(feat_bf16, w_taps):
        """3x3 / stride 1 / pad 1 conv as 9 shifted-window matmuls (no patch temp)."""
        featpad_ref[1:Hq + 1, 1:Wq + 1, :] = feat_bf16.reshape(Hq, Wq, C)
        xp = featpad_ref[...]
        acc = None
        for t in range(9):
            dy, dx = divmod(t, 3)
            win = xp[dy:dy + Hq, dx:dx + Wq, :].reshape(Pq, C)
            d = jnp.dot(win, w_taps[t], preferred_element_type=jnp.float32)
            acc = d if acc is None else acc + d
        return acc                                     # (Pq, cout) f32

    # --- zero only the halos (border slabs; cheap, and safe under a megacore split) --
    s2dpad_ref[0:1, :, :] = jnp.zeros((1, Wq + 1, C4h), jnp.bfloat16)
    s2dpad_ref[:, 0:1, :] = jnp.zeros((Hq + 1, 1, C4h), jnp.bfloat16)
    featpad_ref[0:1, :, :] = jnp.zeros((1, Wq + 2, C), jnp.bfloat16)
    featpad_ref[Hq + 1:Hq + 2, :, :] = jnp.zeros((1, Wq + 2, C), jnp.bfloat16)
    featpad_ref[:, 0:1, :] = jnp.zeros((Hq + 2, 1, C), jnp.bfloat16)
    featpad_ref[:, Wq + 1:Wq + 2, :] = jnp.zeros((Hq + 2, 1, C), jnp.bfloat16)

    # --- conv0[1]: stride-2 3x3 == stride-1 2x2 over the space-to-depth input --------
    s2dpad_ref[1:Hq + 1, 1:Wq + 1, :] = s2d_ref[0]
    sp = s2dpad_ref[...]
    acc = None
    for t in range(4):
        a, b = divmod(t, 2)
        win = sp[a:a + Hq, b:b + Wq, :].reshape(Pq, C4h)
        d = jnp.dot(win, w01_ref[t], preferred_element_type=jnp.float32)
        acc = d if acc is None else acc + d
    feat = bias_prelu(acc, ba01_ref[...]).astype(jnp.bfloat16)     # (Pq, C) bf16
    res = feat

    # --- convblock: 8 x [3x3 conv + PReLU], fori_loop with dynamic weight slabs ------
    def layer_body(l, f):
        z = conv3x3(f, wcb_ref[l])                     # wcb_ref[l]: (9, C, C) bf16
        return bias_prelu(z, bacb_ref[l]).astype(jnp.bfloat16)

    feat = lax.fori_loop(0, 8, layer_body, feat)
    feat = feat + res                                  # residual

    # --- lastconv: ConvTranspose2d(C, 5, 4, 2, 1) as a packed sub-pixel 3x3 conv -----
    z = conv3x3(feat, wlast_ref[...]) + blast_ref[...]
    # lane-dense HBM store: channels-first (20, Hq*Wq), pixels on the lane axis.
    o_ref[0] = jnp.transpose(z)


def ifblock_trunk(s2df0, w01, ba01, wcb, bacb, wlast, blast):
    N, Hq, Wq, C4h = s2df0.shape
    C = w01.shape[2]
    Pq = Hq * Wq
    kernel = functools.partial(_trunk_kernel, Hq=Hq, Wq=Wq, C=C, C4h=C4h)
    return pl.pallas_call(
        kernel,
        out_shape=jax.ShapeDtypeStruct((N, 20, Pq), jnp.float32),
        grid=(N,),
        in_specs=[
            pl.BlockSpec((1, Hq, Wq, C4h), lambda n: (n, 0, 0, 0)),   # s2d(f0) block
            _const_spec((4, C4h, C), lambda n: (0, 0, 0)),            # conv0[1] weights
            _const_spec((2, C), lambda n: (0, 0)),                    # conv0[1] bias/alpha
            _const_spec((8, 9, C, C), lambda n: (0, 0, 0, 0)),        # convblock weights
            _const_spec((8, 2, C), lambda n: (0, 0, 0)),              # convblock bias/alpha
            _const_spec((9, C, 20), lambda n: (0, 0, 0)),             # lastconv packed
            _const_spec((1, 20), lambda n: (0, 0)),                   # lastconv bias
        ],
        out_specs=pl.BlockSpec((1, 20, Pq), lambda n: (n, 0, 0)),
        scratch_shapes=[
            pltpu.VMEM((Hq + 1, Wq + 1, C4h), jnp.bfloat16),   # conv0[1] halo scratch
            pltpu.VMEM((Hq + 2, Wq + 2, C), jnp.bfloat16),     # 3x3 conv halo scratch
        ],
        compiler_params=_compiler_params(),
    )(s2df0, w01, ba01, wcb, bacb, wlast, blast)


# ---------------------------------------------------------------------------
# Plain-JAX glue (layout plumbing only): space-to-depth, matmul-based bilinear
# resize, weight packing.
# ---------------------------------------------------------------------------
def space_to_depth2(x_nhwc):
    """(N,H,W,C) -> (N, ceil(H/2), ceil(W/2), 4C); channel block index = (2p+q)*C + c."""
    N, H, W, C = x_nhwc.shape
    He, We = -(-H // 2) * 2, -(-W // 2) * 2
    if (He, We) != (H, W):
        x_nhwc = jnp.pad(x_nhwc, ((0, 0), (0, He - H), (0, We - W), (0, 0)))
    x = x_nhwc.reshape(N, He // 2, 2, We // 2, 2, C)
    x = jnp.transpose(x, (0, 1, 3, 2, 4, 5))
    return x.reshape(N, He // 2, We // 2, 4 * C)


def _interp_matrix(out_size, in_size):
    """Dense row-interp matrix matching F.interpolate(bilinear, align_corners=False)."""
    o = jnp.arange(out_size, dtype=jnp.float32)
    src = jnp.clip((o + 0.5) * (in_size / out_size) - 0.5, 0.0, in_size - 1.0)
    lo = jnp.floor(src)
    frac = src - lo
    lo_i = lo.astype(jnp.int32)
    hi_i = jnp.minimum(lo_i + 1, in_size - 1)
    cols = jnp.arange(in_size, dtype=jnp.int32)[None, :]
    return ((cols == lo_i[:, None]).astype(jnp.float32) * (1.0 - frac)[:, None]
            + (cols == hi_i[:, None]).astype(jnp.float32) * frac[:, None])


def bilinear_resize_nchw(x, out_h, out_w):
    """Bilinear resize (align_corners=False) as two separable matmuls (no gathers)."""
    N, C, H, W = x.shape
    if (out_h, out_w) == (H, W):
        return x
    ry = _interp_matrix(out_h, H)                      # (out_h, H)
    rx = _interp_matrix(out_w, W)                      # (out_w, W)
    y = jnp.einsum("oh,nchw->ncow", ry, x)
    return jnp.einsum("pw,ncow->ncop", rx, y)


_S2D_TAP = {(0, 1): 0, (1, 0): 1, (1, 1): 2}   # (window offset, parity) -> 3x3 tap index


def _pack_stride2_conv(w):
    """(3,3,cin,cout) stride-2 pad-1 conv -> (4, 4*cin, cout) 2x2 conv over s2d input."""
    _, _, cin, cout = w.shape
    wp = jnp.zeros((2, 2, 4 * cin, cout), jnp.float32)
    for a in range(2):
        for p in range(2):
            dy = _S2D_TAP.get((a, p))
            if dy is None:
                continue
            for b in range(2):
                for q in range(2):
                    dx = _S2D_TAP.get((b, q))
                    if dx is None:
                        continue
                    ph = 2 * p + q
                    wp = wp.at[a, b, ph * cin:(ph + 1) * cin, :].set(w[dy, dx])
    return wp.reshape(4, 4 * cin, cout).astype(jnp.bfloat16)


def _pack_deconv_subpixel(wt, b5):
    """Pack ConvTranspose2d(C,5,4,2,1) weights for the sub-pixel 3x3 decomposition.

    wt: (4,4,C,5) with wt[ky,kx,ci,co] == PyTorch W_pt[ci,co,ky,kx].
    Output wlast: (9, C, 20) so that 9 shifted-window matmuls over the zero-padded
    quarter-res feature give, per pixel, the 4 sub-pixel outputs x 5 channels
    (channel index = (2*sy+sx)*5 + co), exactly matching the transposed conv.
    """
    C = wt.shape[2]
    wbig = jnp.zeros((3, 3, C, 20), jnp.float32)
    for sy in range(2):
        for sx in range(2):
            oc0 = (sy * 2 + sx) * 5
            for dy in range(2):
                for dx in range(2):
                    ey, ex = sy + dy, sx + dx
                    ky, kx = 3 - sy - 2 * dy, 3 - sx - 2 * dx
                    wbig = wbig.at[ey, ex, :, oc0:oc0 + 5].set(wt[ky, kx])
    b20 = jnp.tile(b5, 4).reshape(1, 20).astype(jnp.float32)
    return wbig.reshape(9, C, 20).astype(jnp.bfloat16), b20


# ---------------------------------------------------------------------------
# Parameter init (deterministic, synthetic) — pre-packed into kernel-ready layouts.
# Conv2d weight W_pt[cout,cin,ky,kx] corresponds to w[ky,kx,cin,cout] here.
# ---------------------------------------------------------------------------
def init_ifblock_params(key, in_planes, c):
    keys = jax.random.split(key, 24)

    def raw_conv(kw, kb, cin, cout):
        fan = 9 * cin
        w = jax.random.normal(kw, (3, 3, cin, cout), jnp.float32) / math.sqrt(fan)
        b = jax.random.normal(kb, (cout,), jnp.float32) * 0.01
        a = jnp.full((cout,), 0.25, jnp.float32)       # nn.PReLU default init
        return w, jnp.stack([b, a], axis=0)            # (3,3,cin,cout), (2,cout) f32

    w00_raw, ba00 = raw_conv(keys[0], keys[1], in_planes, c // 2)
    w01_raw, ba01 = raw_conv(keys[2], keys[3], c // 2, c)

    wcb_l, bacb_l = [], []
    for i in range(8):
        w, ba = raw_conv(keys[4 + 2 * i], keys[5 + 2 * i], c, c)
        wcb_l.append(w.reshape(9, c, c))               # tap t = dy*3 + dx
        bacb_l.append(ba)

    wt = jax.random.normal(keys[20], (4, 4, c, 5), jnp.float32) / math.sqrt(16.0 * c)
    b5 = jax.random.normal(keys[21], (5,), jnp.float32) * 0.01
    wlast, blast = _pack_deconv_subpixel(wt, b5)

    return {
        "w00": _pack_stride2_conv(w00_raw), "ba00": ba00,     # (4, 4*in, c//2), (2, c//2)
        "w01": _pack_stride2_conv(w01_raw), "ba01": ba01,     # (4, 2c, c), (2, c)
        "wcb": jnp.stack(wcb_l).astype(jnp.bfloat16),         # (8, 9, c, c) bf16
        "bacb": jnp.stack(bacb_l),                            # (8, 2, c) f32
        "wlast": wlast, "blast": blast,                       # (9, c, 20) bf16, (1, 20)
    }


# ---------------------------------------------------------------------------
# IFBlock forward (NCHW in / NCHW out, like the PyTorch module)
# ---------------------------------------------------------------------------
def ifblock_forward(params, x_nchw, flow_nchw=None, scale=1):
    x = x_nchw.astype(jnp.float32)
    N, _, H, W = x.shape
    sh = int(math.floor(H * (1.0 / scale)))
    sw = int(math.floor(W * (1.0 / scale)))
    x = bilinear_resize_nchw(x, sh, sw)
    if flow_nchw is not None:
        f = bilinear_resize_nchw(flow_nchw.astype(jnp.float32), sh, sw) * (1.0 / scale)
        x = jnp.concatenate([x, f], axis=1)
    x = jnp.transpose(x, (0, 2, 3, 1))                 # NCHW -> NHWC (lane = channels)

    # conv0[0]: stride-2 conv + PReLU via space-to-depth (no XLA im2col, no 2.25x HBM).
    s2dx = space_to_depth2(x.astype(jnp.bfloat16))     # (N, H1, W1, 4*Cin) bf16
    f0 = conv0_stage_a(s2dx, params["w00"], params["ba00"])   # (N, H1, W1, c//2) bf16

    # conv0[1] + 8-layer convblock + residual + lastconv: one fused VMEM-resident kernel.
    s2df0 = space_to_depth2(f0)                        # (N, Hq, Wq, 2c) bf16
    _, Hq, Wq, _ = s2df0.shape
    out20 = ifblock_trunk(s2df0, params["w01"], params["ba01"], params["wcb"],
                          params["bacb"], params["wlast"], params["blast"])

    # pixel shuffle: (N, 20, Hq*Wq) -> (N, 5, 2Hq, 2Wq)   (channel = (2sy+sx)*5 + co)
    Hh, Wh = 2 * Hq, 2 * Wq
    t = out20.reshape(N, 2, 2, 5, Hq, Wq)
    t = jnp.transpose(t, (0, 3, 4, 1, 5, 2)).reshape(N, 5, Hh, Wh)

    # final bilinear x(scale*2) via separable matmuls + flow scaling.
    out_h = int(math.floor(Hh * scale * 2))
    out_w = int(math.floor(Wh * scale * 2))
    t = bilinear_resize_nchw(t, out_h, out_w)
    flow_out = t[:, :4] * (scale * 2.0)
    mask = t[:, 4:5]
    return flow_out, mask


if __name__ == "__main__":
    key = jax.random.PRNGKey(0)
    kx, kp = jax.random.split(key)
    # small shapes: batch=2, in_planes=4, spatial=16, c=16 (NCHW input, like PyTorch)
    x = jax.random.normal(kx, (2, 4, 16, 16), jnp.float32)
    params = init_ifblock_params(kp, in_planes=4, c=16)

    fwd = jax.jit(functools.partial(ifblock_forward, scale=1))
    flow, mask = fwd(params, x)
    jax.block_until_ready((flow, mask))

    assert flow.shape == (2, 4, 16, 16), flow.shape
    assert mask.shape == (2, 1, 16, 16), mask.shape
    assert bool(jnp.all(jnp.isfinite(flow))) and bool(jnp.all(jnp.isfinite(mask)))
    print("KERNEL_OK")
</pallas_src>

<mosaic_0001>
module attributes {stable_mosaic.version = 11 : i64} {
  func.func @_conv0a_kernel(%arg0: i32, %arg1: memref<1x8x8x16xbf16, #tpu.memory_space<vmem>>, %arg2: memref<4x16x8xbf16, #tpu.memory_space<vmem>>, %arg3: memref<2x8xf32, #tpu.memory_space<vmem>>, %arg4: memref<1x8x8x8xbf16, #tpu.memory_space<vmem>>, %arg5: memref<9x9x16xbf16, #tpu.memory_space<vmem>>) attributes {dimension_semantics = [#tpu.dimension_semantics<parallel>], iteration_bounds = array<i64: 2>, scalar_prefetch = 0 : i64, scratch_operands = 1 : i64, tpu.core_type = #tpu.core_type<tc>, window_params = [{transform_indices = @transform_0, window_bounds = array<i64: 1, 8, 8, 16>}, {pipeline_mode = #tpu.pipeline_mode<synchronous>, transform_indices = @transform_1, window_bounds = array<i64: 4, 16, 8>}, {pipeline_mode = #tpu.pipeline_mode<synchronous>, transform_indices = @transform_2, window_bounds = array<i64: 2, 8>}, {transform_indices = @transform_3, window_bounds = array<i64: 1, 8, 8, 8>}]} {
    %cst = arith.constant 0.000000e+00 : bf16
    %0 = vector.broadcast %cst : bf16 to vector<1x9x16xbf16>
    %c0 = arith.constant 0 : index
    %c0_0 = arith.constant 0 : index
    %c0_1 = arith.constant 0 : index
    %1 = vector.load %arg5[%c0, %c0_0, %c0_1] : memref<9x9x16xbf16, #tpu.memory_space<vmem>>, vector<1x9x16xbf16>
    tpu.vector_store %arg5[%c0, %c0_0, %c0_1], %0 {strides = array<i32>} : memref<9x9x16xbf16, #tpu.memory_space<vmem>>, vector<1x9x16xbf16>,
    %cst_2 = arith.constant 0.000000e+00 : bf16
    %2 = vector.broadcast %cst_2 : bf16 to vector<9x1x16xbf16>
    %c0_3 = arith.constant 0 : index
    %c0_4 = arith.constant 0 : index
    %c0_5 = arith.constant 0 : index
    %3 = vector.load %arg5[%c0_3, %c0_4, %c0_5] : memref<9x9x16xbf16, #tpu.memory_space<vmem>>, vector<9x1x16xbf16>
    tpu.vector_store %arg5[%c0_3, %c0_4, %c0_5], %2 {strides = array<i32>} : memref<9x9x16xbf16, #tpu.memory_space<vmem>>, vector<9x1x16xbf16>,
    %c0_6 = arith.constant 0 : index
    %c0_7 = arith.constant 0 : index
    %c0_8 = arith.constant 0 : index
    %c0_9 = arith.constant 0 : index
    %4 = vector.load %arg1[%c0_6, %c0_7, %c0_8, %c0_9] : memref<1x8x8x16xbf16, #tpu.memory_space<vmem>>, vector<1x8x8x16xbf16>
    %5 = vector.shape_cast %4 : vector<1x8x8x16xbf16> to vector<8x8x16xbf16>
    %c1 = arith.constant 1 : index
    %c1_10 = arith.constant 1 : index
    %c0_11 = arith.constant 0 : index
    %6 = vector.load %arg5[%c1, %c1_10, %c0_11] : memref<9x9x16xbf16, #tpu.memory_space<vmem>>, vector<8x8x16xbf16>
    tpu.vector_store %arg5[%c1, %c1_10, %c0_11], %5 {strides = array<i32>} : memref<9x9x16xbf16, #tpu.memory_space<vmem>>, vector<8x8x16xbf16>,
    %c0_12 = arith.constant 0 : index
    %c0_13 = arith.constant 0 : index
    %c0_14 = arith.constant 0 : index
    %7 = vector.load %arg5[%c0_12, %c0_13, %c0_14] : memref<9x9x16xbf16, #tpu.memory_space<vmem>>, vector<9x9x16xbf16>
    %8 = vector.extract_strided_slice %7 {offsets = [0, 0, 0], sizes = [8, 8, 16], strides = [1, 1, 1]} : vector<9x9x16xbf16> to vector<8x8x16xbf16>
    %9 = vector.shape_cast %8 : vector<8x8x16xbf16> to vector<64x16xbf16>
    %c0_15 = arith.constant 0 : index
    %c0_16 = arith.constant 0 : index
    %c0_17 = arith.constant 0 : index
    %10 = vector.load %arg2[%c0_15, %c0_16, %c0_17] : memref<4x16x8xbf16, #tpu.memory_space<vmem>>, vector<1x16x8xbf16>
    %11 = vector.shape_cast %10 : vector<1x16x8xbf16> to vector<16x8xbf16>
    %cst_18 = arith.constant dense<0.000000e+00> : vector<64x8xf32>
    %12 = tpu.matmul %9, %11, %cst_18 {dimension_numbers = #tpu.dot_dimension_numbers<[1], [0], [0], [1], [0, 0, 1, 1], [], []>} : vector<64x16xbf16>, vector<16x8xbf16>, vector<64x8xf32> -> vector<64x8xf32>
    %13 = vector.extract_strided_slice %7 {offsets = [0, 1, 0], sizes = [8, 8, 16], strides = [1, 1, 1]} : vector<9x9x16xbf16> to vector<8x8x16xbf16>
    %14 = vector.shape_cast %13 : vector<8x8x16xbf16> to vector<64x16xbf16>
    %c1_19 = arith.constant 1 : index
    %c0_20 = arith.constant 0 : index
    %c0_21 = arith.constant 0 : index
    %15 = vector.load %arg2[%c1_19, %c0_20, %c0_21] : memref<4x16x8xbf16, #tpu.memory_space<vmem>>, vector<1x16x8xbf16>
    %16 = vector.shape_cast %15 : vector<1x16x8xbf16> to vector<16x8xbf16>
    %cst_22 = arith.constant dense<0.000000e+00> : vector<64x8xf32>
    %17 = tpu.matmul %14, %16, %cst_22 {dimension_numbers = #tpu.dot_dimension_numbers<[1], [0], [0], [1], [0, 0, 1, 1], [], []>} : vector<64x16xbf16>, vector<16x8xbf16>, vector<64x8xf32> -> vector<64x8xf32>
    %18 = arith.addf %12, %17 : vector<64x8xf32>
    %19 = vector.extract_strided_slice %7 {offsets = [1, 0, 0], sizes = [8, 8, 16], strides = [1, 1, 1]} : vector<9x9x16xbf16> to vector<8x8x16xbf16>
    %20 = vector.shape_cast %19 : vector<8x8x16xbf16> to vector<64x16xbf16>
    %c2 = arith.constant 2 : index
    %c0_23 = arith.constant 0 : index
    %c0_24 = arith.constant 0 : index
    %21 = vector.load %arg2[%c2, %c0_23, %c0_24] : memref<4x16x8xbf16, #tpu.memory_space<vmem>>, vector<1x16x8xbf16>
    %22 = vector.shape_cast %21 : vector<1x16x8xbf16> to vector<16x8xbf16>
    %cst_25 = arith.constant dense<0.000000e+00> : vector<64x8xf32>
    %23 = tpu.matmul %20, %22, %cst_25 {dimension_numbers = #tpu.dot_dimension_numbers<[1], [0], [0], [1], [0, 0, 1, 1], [], []>} : vector<64x16xbf16>, vector<16x8xbf16>, vector<64x8xf32> -> vector<64x8xf32>
    %24 = arith.addf %18, %23 : vector<64x8xf32>
    %25 = vector.extract_strided_slice %7 {offsets = [1, 1, 0], sizes = [8, 8, 16], strides = [1, 1, 1]} : vector<9x9x16xbf16> to vector<8x8x16xbf16>
    %26 = vector.shape_cast %25 : vector<8x8x16xbf16> to vector<64x16xbf16>
    %c3 = arith.constant 3 : index
    %c0_26 = arith.constant 0 : index
    %c0_27 = arith.constant 0 : index
    %27 = vector.load %arg2[%c3, %c0_26, %c0_27] : memref<4x16x8xbf16, #tpu.memory_space<vmem>>, vector<1x16x8xbf16>
    %28 = vector.shape_cast %27 : vector<1x16x8xbf16> to vector<16x8xbf16>
    %cst_28 = arith.constant dense<0.000000e+00> : vector<64x8xf32>
    %29 = tpu.matmul %26, %28, %cst_28 {dimension_numbers = #tpu.dot_dimension_numbers<[1], [0], [0], [1], [0, 0, 1, 1], [], []>} : vector<64x16xbf16>, vector<16x8xbf16>, vector<64x8xf32> -> vector<64x8xf32>
    %30 = arith.addf %24, %29 : vector<64x8xf32>
    %c0_29 = arith.constant 0 : index
    %c0_30 = arith.constant 0 : index
    %31 = vector.load %arg3[%c0_29, %c0_30] : memref<2x8xf32, #tpu.memory_space<vmem>>, vector<1x8xf32>
    %32 = vector.broadcast %31 : vector<1x8xf32> to vector<64x8xf32>
    %33 = arith.addf %30, %32 : vector<64x8xf32>
    %cst_31 = arith.constant 0.000000e+00 : f32
    %34 = vector.broadcast %cst_31 : f32 to vector<64x8xf32>
    %35 = arith.cmpf oge, %33, %34 : vector<64x8xf32>
    %c1_32 = arith.constant 1 : index
    %c0_33 = arith.constant 0 : index
    %36 = vector.load %arg3[%c1_32, %c0_33] : memref<2x8xf32, #tpu.memory_space<vmem>>, vector<1x8xf32>
    %37 = vector.broadcast %36 : vector<1x8xf32> to vector<64x8xf32>
    %38 = arith.mulf %37, %33 : vector<64x8xf32>
    %39 = arith.select %35, %33, %38 : vector<64x8xi1>, vector<64x8xf32>
    %40 = vector.shape_cast %39 : vector<64x8xf32> to vector<8x8x8xf32>
    %41 = arith.truncf %40 : vector<8x8x8xf32> to vector<8x8x8xbf16>
    %c0_34 = arith.constant 0 : index
    %c0_35 = arith.constant 0 : index
    %c0_36 = arith.constant 0 : index
    %c0_37 = arith.constant 0 : index
    %42 = vector.load %arg4[%c0_34, %c0_35, %c0_36, %c0_37] : memref<1x8x8x8xbf16, #tpu.memory_space<vmem>>, vector<1x8x8x8xbf16>
    %43 = vector.shape_cast %42 : vector<1x8x8x8xbf16> to vector<8x8x8xbf16>
    %44 = vector.shape_cast %41 : vector<8x8x8xbf16> to vector<1x8x8x8xbf16>
    tpu.vector_store %arg4[%c0_34, %c0_35, %c0_36, %c0_37], %44 {strides = array<i32>} : memref<1x8x8x8xbf16, #tpu.memory_space<vmem>>, vector<1x8x8x8xbf16>,
    return
  }
  func.func @transform_0(%arg0: i32) -> (i32, i32, i32, i32) {
    %c0_i32 = arith.constant 0 : i32
    %c0_i32_0 = arith.constant 0 : i32
    %c0_i32_1 = arith.constant 0 : i32
    %c0_i32_2 = arith.constant 0 : i32
    return %arg0, %c0_i32, %c0_i32_0, %c0_i32_1 : i32, i32, i32, i32
  }
  func.func @transform_1(%arg0: i32) -> (i32, i32, i32) {
    %c0_i32 = arith.constant 0 : i32
    %c0_i32_0 = arith.constant 0 : i32
    %c0_i32_1 = arith.constant 0 : i32
    %c0_i32_2 = arith.constant 0 : i32
    return %c0_i32, %c0_i32_0, %c0_i32_1 : i32, i32, i32
  }
  func.func @transform_2(%arg0: i32) -> (i32, i32) {
    %c0_i32 = arith.constant 0 : i32
    %c0_i32_0 = arith.constant 0 : i32
    %c0_i32_1 = arith.constant 0 : i32
    return %c0_i32, %c0_i32_0 : i32, i32
  }
  func.func @transform_3(%arg0: i32) -> (i32, i32, i32, i32) {
    %c0_i32 = arith.constant 0 : i32
    %c0_i32_0 = arith.constant 0 : i32
    %c0_i32_1 = arith.constant 0 : i32
    %c0_i32_2 = arith.constant 0 : i32
    return %arg0, %c0_i32, %c0_i32_0, %c0_i32_1 : i32, i32, i32, i32
  }
}

module attributes {stable_mosaic.version = 11 : i64} {
  func.func @_trunk_kernel(%arg0: i32, %arg1: memref<1x4x4x32xbf16, #tpu.memory_space<vmem>>, %arg2: memref<4x32x16xbf16, #tpu.memory_space<vmem>>, %arg3: memref<2x16xf32, #tpu.memory_space<vmem>>, %arg4: memref<8x9x16x16xbf16, #tpu.memory_space<vmem>>, %arg5: memref<8x2x16xf32, #tpu.memory_space<vmem>>, %arg6: memref<9x16x20xbf16, #tpu.memory_space<vmem>>, %arg7: memref<1x20xf32, #tpu.memory_space<vmem>>, %arg8: memref<1x20x16xf32, #tpu.memory_space<vmem>>, %arg9: memref<5x5x32xbf16, #tpu.memory_space<vmem>>, %arg10: memref<6x6x16xbf16, #tpu.memory_space<vmem>>) attributes {dimension_semantics = [#tpu.dimension_semantics<parallel>], iteration_bounds = array<i64: 2>, scalar_prefetch = 0 : i64, scratch_operands = 2 : i64, tpu.core_type = #tpu.core_type<tc>, window_params = [{transform_indices = @transform_0, window_bounds = array<i64: 1, 4, 4, 32>}, {pipeline_mode = #tpu.pipeline_mode<synchronous>, transform_indices = @transform_1, window_bounds = array<i64: 4, 32, 16>}, {pipeline_mode = #tpu.pipeline_mode<synchronous>, transform_indices = @transform_2, window_bounds = array<i64: 2, 16>}, {pipeline_mode = #tpu.pipeline_mode<synchronous>, transform_indices = @transform_3, window_bounds = array<i64: 8, 9, 16, 16>}, {pipeline_mode = #tpu.pipeline_mode<synchronous>, transform_indices = @transform_4, window_bounds = array<i64: 8, 2, 16>}, {pipeline_mode = #tpu.pipeline_mode<synchronous>, transform_indices = @transform_5, window_bounds = array<i64: 9, 16, 20>}, {pipeline_mode = #tpu.pipeline_mode<synchronous>, transform_indices = @transform_6, window_bounds = array<i64: 1, 20>}, {transform_indices = @transform_7, window_bounds = array<i64: 1, 20, 16>}]} {
    %cst = arith.constant 0.000000e+00 : bf16
    %0 = vector.broadcast %cst : bf16 to vector<1x5x32xbf16>
    %c0 = arith.constant 0 : index
    %c0_0 = arith.constant 0 : index
    %c0_1 = arith.constant 0 : index
    %1 = vector.load %arg9[%c0, %c0_0, %c0_1] : memref<5x5x32xbf16, #tpu.memory_space<vmem>>, vector<1x5x32xbf16>
    tpu.vector_store %arg9[%c0, %c0_0, %c0_1], %0 {strides = array<i32>} : memref<5x5x32xbf16, #tpu.memory_space<vmem>>, vector<1x5x32xbf16>,
    %cst_2 = arith.constant 0.000000e+00 : bf16
    %2 = vector.broadcast %cst_2 : bf16 to vector<5x1x32xbf16>
    %c0_3 = arith.constant 0 : index
    %c0_4 = arith.constant 0 : index
    %c0_5 = arith.constant 0 : index
    %3 = vector.load %arg9[%c0_3, %c0_4, %c0_5] : memref<5x5x32xbf16, #tpu.memory_space<vmem>>, vector<5x1x32xbf16>
    tpu.vector_store %arg9[%c0_3, %c0_4, %c0_5], %2 {strides = array<i32>} : memref<5x5x32xbf16, #tpu.memory_space<vmem>>, vector<5x1x32xbf16>,
    %cst_6 = arith.constant 0.000000e+00 : bf16
    %4 = vector.broadcast %cst_6 : bf16 to vector<1x6x16xbf16>
    %c0_7 = arith.constant 0 : index
    %c0_8 = arith.constant 0 : index
    %c0_9 = arith.constant 0 : index
    %5 = vector.load %arg10[%c0_7, %c0_8, %c0_9] : memref<6x6x16xbf16, #tpu.memory_space<vmem>>, vector<1x6x16xbf16>
    tpu.vector_store %arg10[%c0_7, %c0_8, %c0_9], %4 {strides = array<i32>} : memref<6x6x16xbf16, #tpu.memory_space<vmem>>, vector<1x6x16xbf16>,
    %cst_10 = arith.constant 0.000000e+00 : bf16
    %6 = vector.broadcast %cst_10 : bf16 to vector<1x6x16xbf16>
    %c5 = arith.constant 5 : index
    %c0_11 = arith.constant 0 : index
    %c0_12 = arith.constant 0 : index
    %7 = vector.load %arg10[%c5, %c0_11, %c0_12] : memref<6x6x16xbf16, #tpu.memory_space<vmem>>, vector<1x6x16xbf16>
    tpu.vector_store %arg10[%c5, %c0_11, %c0_12], %6 {strides = array<i32>} : memref<6x6x16xbf16, #tpu.memory_space<vmem>>, vector<1x6x16xbf16>,
    %cst_13 = arith.constant 0.000000e+00 : bf16
    %8 = vector.broadcast %cst_13 : bf16 to vector<6x1x16xbf16>
    %c0_14 = arith.constant 0 : index
    %c0_15 = arith.constant 0 : index
    %c0_16 = arith.constant 0 : index
    %9 = vector.load %arg10[%c0_14, %c0_15, %c0_16] : memref<6x6x16xbf16, #tpu.memory_space<vmem>>, vector<6x1x16xbf16>
    tpu.vector_store %arg10[%c0_14, %c0_15, %c0_16], %8 {strides = array<i32>} : memref<6x6x16xbf16, #tpu.memory_space<vmem>>, vector<6x1x16xbf16>,
    %cst_17 = arith.constant 0.000000e+00 : bf16
    %10 = vector.broadcast %cst_17 : bf16 to vector<6x1x16xbf16>
    %c0_18 = arith.constant 0 : index
    %c5_19 = arith.constant 5 : index
    %c0_20 = arith.constant 0 : index
    %11 = vector.load %arg10[%c0_18, %c5_19, %c0_20] : memref<6x6x16xbf16, #tpu.memory_space<vmem>>, vector<6x1x16xbf16>
    tpu.vector_store %arg10[%c0_18, %c5_19, %c0_20], %10 {strides = array<i32>} : memref<6x6x16xbf16, #tpu.memory_space<vmem>>, vector<6x1x16xbf16>,
    %c0_21 = arith.constant 0 : index
    %c0_22 = arith.constant 0 : index
    %c0_23 = arith.constant 0 : index
    %c0_24 = arith.constant 0 : index
    %12 = vector.load %arg1[%c0_21, %c0_22, %c0_23, %c0_24] : memref<1x4x4x32xbf16, #tpu.memory_space<vmem>>, vector<1x4x4x32xbf16>
    %13 = vector.shape_cast %12 : vector<1x4x4x32xbf16> to vector<4x4x32xbf16>
    %c1 = arith.constant 1 : index
    %c1_25 = arith.constant 1 : index
    %c0_26 = arith.constant 0 : index
    %14 = vector.load %arg9[%c1, %c1_25, %c0_26] : memref<5x5x32xbf16, #tpu.memory_space<vmem>>, vector<4x4x32xbf16>
    tpu.vector_store %arg9[%c1, %c1_25, %c0_26], %13 {strides = array<i32>} : memref<5x5x32xbf16, #tpu.memory_space<vmem>>, vector<4x4x32xbf16>,
    %c0_27 = arith.constant 0 : index
    %c0_28 = arith.constant 0 : index
    %c0_29 = arith.constant 0 : index
    %15 = vector.load %arg9[%c0_27, %c0_28, %c0_29] : memref<5x5x32xbf16, #tpu.memory_space<vmem>>, vector<5x5x32xbf16>
    %16 = vector.extract_strided_slice %15 {offsets = [0, 0, 0], sizes = [4, 4, 32], strides = [1, 1, 1]} : vector<5x5x32xbf16> to vector<4x4x32xbf16>
    %17 = vector.shape_cast %16 : vector<4x4x32xbf16> to vector<16x32xbf16>
    %c0_30 = arith.constant 0 : index
    %c0_31 = arith.constant 0 : index
    %c0_32 = arith.constant 0 : index
    %18 = vector.load %arg2[%c0_30, %c0_31, %c0_32] : memref<4x32x16xbf16, #tpu.memory_space<vmem>>, vector<1x32x16xbf16>
    %19 = vector.shape_cast %18 : vector<1x32x16xbf16> to vector<32x16xbf16>
    %cst_33 = arith.constant dense<0.000000e+00> : vector<16x16xf32>
    %20 = tpu.matmul %17, %19, %cst_33 {dimension_numbers = #tpu.dot_dimension_numbers<[1], [0], [0], [1], [0, 0, 1, 1], [], []>} : vector<16x32xbf16>, vector<32x16xbf16>, vector<16x16xf32> -> vector<16x16xf32>
    %21 = vector.extract_strided_slice %15 {offsets = [0, 1, 0], sizes = [4, 4, 32], strides = [1, 1, 1]} : vector<5x5x32xbf16> to vector<4x4x32xbf16>
    %22 = vector.shape_cast %21 : vector<4x4x32xbf16> to vector<16x32xbf16>
    %c1_34 = arith.constant 1 : index
    %c0_35 = arith.constant 0 : index
    %c0_36 = arith.constant 0 : index
    %23 = vector.load %arg2[%c1_34, %c0_35, %c0_36] : memref<4x32x16xbf16, #tpu.memory_space<vmem>>, vector<1x32x16xbf16>
    %24 = vector.shape_cast %23 : vector<1x32x16xbf16> to vector<32x16xbf16>
    %cst_37 = arith.constant dense<0.000000e+00> : vector<16x16xf32>
    %25 = tpu.matmul %22, %24, %cst_37 {dimension_numbers = #tpu.dot_dimension_numbers<[1], [0], [0], [1], [0, 0, 1, 1], [], []>} : vector<16x32xbf16>, vector<32x16xbf16>, vector<16x16xf32> -> vector<16x16xf32>
    %26 = arith.addf %20, %25 : vector<16x16xf32>
    %27 = vector.extract_strided_slice %15 {offsets = [1, 0, 0], sizes = [4, 4, 32], strides = [1, 1, 1]} : vector<5x5x32xbf16> to vector<4x4x32xbf16>
    %28 = vector.shape_cast %27 : vector<4x4x32xbf16> to vector<16x32xbf16>
    %c2 = arith.constant 2 : index
    %c0_38 = arith.constant 0 : index
    %c0_39 = arith.constant 0 : index
    %29 = vector.load %arg2[%c2, %c0_38, %c0_39] : memref<4x32x16xbf16, #tpu.memory_space<vmem>>, vector<1x32x16xbf16>
    %30 = vector.shape_cast %29 : vector<1x32x16xbf16> to vector<32x16xbf16>
    %cst_40 = arith.constant dense<0.000000e+00> : vector<16x16xf32>
    %31 = tpu.matmul %28, %30, %cst_40 {dimension_numbers = #tpu.dot_dimension_numbers<[1], [0], [0], [1], [0, 0, 1, 1], [], []>} : vector<16x32xbf16>, vector<32x16xbf16>, vector<16x16xf32> -> vector<16x16xf32>
    %32 = arith.addf %26, %31 : vector<16x16xf32>
    %33 = vector.extract_strided_slice %15 {offsets = [1, 1, 0], sizes = [4, 4, 32], strides = [1, 1, 1]} : vector<5x5x32xbf16> to vector<4x4x32xbf16>
    %34 = vector.shape_cast %33 : vector<4x4x32xbf16> to vector<16x32xbf16>
    %c3 = arith.constant 3 : index
    %c0_41 = arith.constant 0 : index
    %c0_42 = arith.constant 0 : index
    %35 = vector.load %arg2[%c3, %c0_41, %c0_42] : memref<4x32x16xbf16, #tpu.memory_space<vmem>>, vector<1x32x16xbf16>
    %36 = vector.shape_cast %35 : vector<1x32x16xbf16> to vector<32x16xbf16>
    %cst_43 = arith.constant dense<0.000000e+00> : vector<16x16xf32>
    %37 = tpu.matmul %34, %36, %cst_43 {dimension_numbers = #tpu.dot_dimension_numbers<[1], [0], [0], [1], [0, 0, 1, 1], [], []>} : vector<16x32xbf16>, vector<32x16xbf16>, vector<16x16xf32> -> vector<16x16xf32>
    %38 = arith.addf %32, %37 : vector<16x16xf32>
    %c0_44 = arith.constant 0 : index
    %c0_45 = arith.constant 0 : index
    %39 = vector.load %arg3[%c0_44, %c0_45] : memref<2x16xf32, #tpu.memory_space<vmem>>, vector<2x16xf32>
    %40 = vector.extract_strided_slice %39 {offsets = [0, 0], sizes = [1, 16], strides = [1, 1]} : vector<2x16xf32> to vector<1x16xf32>
    %41 = vector.broadcast %40 : vector<1x16xf32> to vector<16x16xf32>
    %42 = arith.addf %38, %41 : vector<16x16xf32>
    %cst_46 = arith.constant 0.000000e+00 : f32
    %43 = vector.broadcast %cst_46 : f32 to vector<16x16xf32>
    %44 = arith.cmpf oge, %42, %43 : vector<16x16xf32>
    %45 = vector.extract_strided_slice %39 {offsets = [1, 0], sizes = [1, 16], strides = [1, 1]} : vector<2x16xf32> to vector<1x16xf32>
    %46 = vector.broadcast %45 : vector<1x16xf32> to vector<16x16xf32>
    %47 = arith.mulf %46, %42 : vector<16x16xf32>
    %48 = arith.select %44, %42, %47 : vector<16x16xi1>, vector<16x16xf32>
    %49 = arith.truncf %48 : vector<16x16xf32> to vector<16x16xbf16>
    %c0_i32 = arith.constant 0 : i32
    %c8_i32 = arith.constant 8 : i32
    %50 = arith.addi %c0_i32, %c8_i32 : i32
    %c1_i32 = arith.constant 1 : i32
    %51 = scf.for %arg11 = %c0_i32 to %50 step %c1_i32 iter_args(%arg12 = %49) -> (vector<16x16xbf16>)  : i32 {
      %117 = arith.index_cast %arg11 : i32 to index
      %c0_71 = arith.constant 0 : index
      %c0_72 = arith.constant 0 : index
      %c0_73 = arith.constant 0 : index
      %118 = vector.load %arg4[%117, %c0_71, %c0_72, %c0_73] : memref<8x9x16x16xbf16, #tpu.memory_space<vmem>>, vector<1x9x16x16xbf16>
      %119 = vector.shape_cast %118 : vector<1x9x16x16xbf16> to vector<9x16x16xbf16>
      %120 = vector.shape_cast %arg12 : vector<16x16xbf16> to vector<4x4x16xbf16>
      %c1_74 = arith.constant 1 : index
      %c1_75 = arith.constant 1 : index
      %c0_76 = arith.constant 0 : index
      %121 = vector.load %arg10[%c1_74, %c1_75, %c0_76] : memref<6x6x16xbf16, #tpu.memory_space<vmem>>, vector<4x4x16xbf16>
      tpu.vector_store %arg10[%c1_74, %c1_75, %c0_76], %120 {strides = array<i32>} : memref<6x6x16xbf16, #tpu.memory_space<vmem>>, vector<4x4x16xbf16>,
      %c0_77 = arith.constant 0 : index
      %c0_78 = arith.constant 0 : index
      %c0_79 = arith.constant 0 : index
      %122 = vector.load %arg10[%c0_77, %c0_78, %c0_79] : memref<6x6x16xbf16, #tpu.memory_space<vmem>>, vector<6x6x16xbf16>
      %123 = vector.extract_strided_slice %122 {offsets = [0, 0, 0], sizes = [4, 4, 16], strides = [1, 1, 1]} : vector<6x6x16xbf16> to vector<4x4x16xbf16>
      %124 = vector.shape_cast %123 : vector<4x4x16xbf16> to vector<16x16xbf16>
      %125 = vector.extract_strided_slice %119 {offsets = [0, 0, 0], sizes = [1, 16, 16], strides = [1, 1, 1]} : vector<9x16x16xbf16> to vector<1x16x16xbf16>
      %126 = vector.shape_cast %125 : vector<1x16x16xbf16> to vector<16x16xbf16>
      %cst_80 = arith.constant dense<0.000000e+00> : vector<16x16xf32>
      %127 = tpu.matmul %124, %126, %cst_80 {dimension_numbers = #tpu.dot_dimension_numbers<[1], [0], [0], [1], [0, 0, 1, 1], [], []>} : vector<16x16xbf16>, vector<16x16xbf16>, vector<16x16xf32> -> vector<16x16xf32>
      %128 = vector.extract_strided_slice %122 {offsets = [0, 1, 0], sizes = [4, 4, 16], strides = [1, 1, 1]} : vector<6x6x16xbf16> to vector<4x4x16xbf16>
      %129 = vector.shape_cast %128 : vector<4x4x16xbf16> to vector<16x16xbf16>
      %130 = vector.extract_strided_slice %119 {offsets = [1, 0, 0], sizes = [1, 16, 16], strides = [1, 1, 1]} : vector<9x16x16xbf16> to vector<1x16x16xbf16>
      %131 = vector.shape_cast %130 : vector<1x16x16xbf16> to vector<16x16xbf16>
      %cst_81 = arith.constant dense<0.000000e+00> : vector<16x16xf32>
      %132 = tpu.matmul %129, %131, %cst_81 {dimension_numbers = #tpu.dot_dimension_numbers<[1], [0], [0], [1], [0, 0, 1, 1], [], []>} : vector<16x16xbf16>, vector<16x16xbf16>, vector<16x16xf32> -> vector<16x16xf32>
      %133 = arith.addf %127, %132 : vector<16x16xf32>
      %134 = vector.extract_strided_slice %122 {offsets = [0, 2, 0], sizes = [4, 4, 16], strides = [1, 1, 1]} : vector<6x6x16xbf16> to vector<4x4x16xbf16>
      %135 = vector.shape_cast %134 : vector<4x4x16xbf16> to vector<16x16xbf16>
      %136 = vector.extract_strided_slice %119 {offsets = [2, 0, 0], sizes = [1, 16, 16], strides = [1, 1, 1]} : vector<9x16x16xbf16> to vector<1x16x16xbf16>
      %137 = vector.shape_cast %136 : vector<1x16x16xbf16> to vector<16x16xbf16>
      %cst_82 = arith.constant dense<0.000000e+00> : vector<16x16xf32>
      %138 = tpu.matmul %135, %137, %cst_82 {dimension_numbers = #tpu.dot_dimension_numbers<[1], [0], [0], [1], [0, 0, 1, 1], [], []>} : vector<16x16xbf16>, vector<16x16xbf16>, vector<16x16xf32> -> vector<16x16xf32>
      %139 = arith.addf %133, %138 : vector<16x16xf32>
      %140 = vector.extract_strided_slice %122 {offsets = [1, 0, 0], sizes = [4, 4, 16], strides = [1, 1, 1]} : vector<6x6x16xbf16> to vector<4x4x16xbf16>
      %141 = vector.shape_cast %140 : vector<4x4x16xbf16> to vector<16x16xbf16>
      %142 = vector.extract_strided_slice %119 {offsets = [3, 0, 0], sizes = [1, 16, 16], strides = [1, 1, 1]} : vector<9x16x16xbf16> to vector<1x16x16xbf16>
      %143 = vector.shape_cast %142 : vector<1x16x16xbf16> to vector<16x16xbf16>
      %cst_83 = arith.constant dense<0.000000e+00> : vector<16x16xf32>
      %144 = tpu.matmul %141, %143, %cst_83 {dimension_numbers = #tpu.dot_dimension_numbers<[1], [0], [0], [1], [0, 0, 1, 1], [], []>} : vector<16x16xbf16>, vector<16x16xbf16>, vector<16x16xf32> -> vector<16x16xf32>
      %145 = arith.addf %139, %144 : vector<16x16xf32>
      %146 = vector.extract_strided_slice %122 {offsets = [1, 1, 0], sizes = [4, 4, 16], strides = [1, 1, 1]} : vector<6x6x16xbf16> to vector<4x4x16xbf16>
      %147 = vector.shape_cast %146 : vector<4x4x16xbf16> to vector<16x16xbf16>
      %148 = vector.extract_strided_slice %119 {offsets = [4, 0, 0], sizes = [1, 16, 16], strides = [1, 1, 1]} : vector<9x16x16xbf16> to vector<1x16x16xbf16>
      %149 = vector.shape_cast %148 : vector<1x16x16xbf16> to vector<16x16xbf16>
      %cst_84 = arith.constant dense<0.000000e+00> : vector<16x16xf32>
      %150 = tpu.matmul %147, %149, %cst_84 {dimension_numbers = #tpu.dot_dimension_numbers<[1], [0], [0], [1], [0, 0, 1, 1], [], []>} : vector<16x16xbf16>, vector<16x16xbf16>, vector<16x16xf32> -> vector<16x16xf32>
      %151 = arith.addf %145, %150 : vector<16x16xf32>
      %152 = vector.extract_strided_slice %122 {offsets = [1, 2, 0], sizes = [4, 4, 16], strides = [1, 1, 1]} : vector<6x6x16xbf16> to vector<4x4x16xbf16>
      %153 = vector.shape_cast %152 : vector<4x4x16xbf16> to vector<16x16xbf16>
      %154 = vector.extract_strided_slice %119 {offsets = [5, 0, 0], sizes = [1, 16, 16], strides = [1, 1, 1]} : vector<9x16x16xbf16> to vector<1x16x16xbf16>
      %155 = vector.shape_cast %154 : vector<1x16x16xbf16> to vector<16x16xbf16>
      %cst_85 = arith.constant dense<0.000000e+00> : vector<16x16xf32>
      %156 = tpu.matmul %153, %155, %cst_85 {dimension_numbers = #tpu.dot_dimension_numbers<[1], [0], [0], [1], [0, 0, 1, 1], [], []>} : vector<16x16xbf16>, vector<16x16xbf16>, vector<16x16xf32> -> vector<16x16xf32>
      %157 = arith.addf %151, %156 : vector<16x16xf32>
      %158 = vector.extract_strided_slice %122 {offsets = [2, 0, 0], sizes = [4, 4, 16], strides = [1, 1, 1]} : vector<6x6x16xbf16> to vector<4x4x16xbf16>
      %159 = vector.shape_cast %158 : vector<4x4x16xbf16> to vector<16x16xbf16>
      %160 = vector.extract_strided_slice %119 {offsets = [6, 0, 0], sizes = [1, 16, 16], strides = [1, 1, 1]} : vector<9x16x16xbf16> to vector<1x16x16xbf16>
      %161 = vector.shape_cast %160 : vector<1x16x16xbf16> to vector<16x16xbf16>
      %cst_86 = arith.constant dense<0.000000e+00> : vector<16x16xf32>
      %162 = tpu.matmul %159, %161, %cst_86 {dimension_numbers = #tpu.dot_dimension_numbers<[1], [0], [0], [1], [0, 0, 1, 1], [], []>} : vector<16x16xbf16>, vector<16x16xbf16>, vector<16x16xf32> -> vector<16x16xf32>
      %163 = arith.addf %157, %162 : vector<16x16xf32>
      %164 = vector.extract_strided_slice %122 {offsets = [2, 1, 0], sizes = [4, 4, 16], strides = [1, 1, 1]} : vector<6x6x16xbf16> to vector<4x4x16xbf16>
      %165 = vector.shape_cast %164 : vector<4x4x16xbf16> to vector<16x16xbf16>
      %166 = vector.extract_strided_slice %119 {offsets = [7, 0, 0], sizes = [1, 16, 16], strides = [1, 1, 1]} : vector<9x16x16xbf16> to vector<1x16x16xbf16>
      %167 = vector.shape_cast %166 : vector<1x16x16xbf16> to vector<16x16xbf16>
      %cst_87 = arith.constant dense<0.000000e+00> : vector<16x16xf32>
      %168 = tpu.matmul %165, %167, %cst_87 {dimension_numbers = #tpu.dot_dimension_numbers<[1], [0], [0], [1], [0, 0, 1, 1], [], []>} : vector<16x16xbf16>, vector<16x16xbf16>, vector<16x16xf32> -> vector<16x16xf32>
      %169 = arith.addf %163, %168 : vector<16x16xf32>
      %170 = vector.extract_strided_slice %122 {offsets = [2, 2, 0], sizes = [4, 4, 16], strides = [1, 1, 1]} : vector<6x6x16xbf16> to vector<4x4x16xbf16>
      %171 = vector.shape_cast %170 : vector<4x4x16xbf16> to vector<16x16xbf16>
      %172 = vector.extract_strided_slice %119 {offsets = [8, 0, 0], sizes = [1, 16, 16], strides = [1, 1, 1]} : vector<9x16x16xbf16> to vector<1x16x16xbf16>
      %173 = vector.shape_cast %172 : vector<1x16x16xbf16> to vector<16x16xbf16>
      %cst_88 = arith.constant dense<0.000000e+00> : vector<16x16xf32>
      %174 = tpu.matmul %171, %173, %cst_88 {dimension_numbers = #tpu.dot_dimension_numbers<[1], [0], [0], [1], [0, 0, 1, 1], [], []>} : vector<16x16xbf16>, vector<16x16xbf16>, vector<16x16xf32> -> vector<16x16xf32>
      %175 = arith.addf %169, %174 : vector<16x16xf32>
      %176 = arith.index_cast %arg11 : i32 to index
      %c0_89 = arith.constant 0 : index
      %c0_90 = arith.constant 0 : index
      %177 = vector.load %arg5[%176, %c0_89, %c0_90] : memref<8x2x16xf32, #tpu.memory_space<vmem>>, vector<1x2x16xf32>
      %178 = vector.shape_cast %177 : vector<1x2x16xf32> to vector<2x16xf32>
      %179 = vector.extract_strided_slice %178 {offsets = [0, 0], sizes = [1, 16], strides = [1, 1]} : vector<2x16xf32> to vector<1x16xf32>
      %180 = vector.broadcast %179 : vector<1x16xf32> to vector<16x16xf32>
      %181 = arith.addf %175, %180 : vector<16x16xf32>
      %cst_91 = arith.constant 0.000000e+00 : f32
      %182 = vector.broadcast %cst_91 : f32 to vector<16x16xf32>
      %183 = arith.cmpf oge, %181, %182 : vector<16x16xf32>
      %184 = vector.extract_strided_slice %178 {offsets = [1, 0], sizes = [1, 16], strides = [1, 1]} : vector<2x16xf32> to vector<1x16xf32>
      %185 = vector.broadcast %184 : vector<1x16xf32> to vector<16x16xf32>
      %186 = arith.mulf %185, %181 : vector<16x16xf32>
      %187 = arith.select %183, %181, %186 : vector<16x16xi1>, vector<16x16xf32>
      %188 = arith.truncf %187 : vector<16x16xf32> to vector<16x16xbf16>
      scf.yield %188 : vector<16x16xbf16>
    }
    %c8_i32_47 = arith.constant 8 : i32
    %52 = arith.addf %51, %49 : vector<16x16xbf16>
    %c0_48 = arith.constant 0 : index
    %c0_49 = arith.constant 0 : index
    %c0_50 = arith.constant 0 : index
    %53 = vector.load %arg6[%c0_48, %c0_49, %c0_50] : memref<9x16x20xbf16, #tpu.memory_space<vmem>>, vector<9x16x20xbf16>
    %54 = vector.shape_cast %52 : vector<16x16xbf16> to vector<4x4x16xbf16>
    %c1_51 = arith.constant 1 : index
    %c1_52 = arith.constant 1 : index
    %c0_53 = arith.constant 0 : index
    %55 = vector.load %arg10[%c1_51, %c1_52, %c0_53] : memref<6x6x16xbf16, #tpu.memory_space<vmem>>, vector<4x4x16xbf16>
    tpu.vector_store %arg10[%c1_51, %c1_52, %c0_53], %54 {strides = array<i32>} : memref<6x6x16xbf16, #tpu.memory_space<vmem>>, vector<4x4x16xbf16>,
    %c0_54 = arith.constant 0 : index
    %c0_55 = arith.constant 0 : index
    %c0_56 = arith.constant 0 : index
    %56 = vector.load %arg10[%c0_54, %c0_55, %c0_56] : memref<6x6x16xbf16, #tpu.memory_space<vmem>>, vector<6x6x16xbf16>
    %57 = vector.extract_strided_slice %56 {offsets = [0, 0, 0], sizes = [4, 4, 16], strides = [1, 1, 1]} : vector<6x6x16xbf16> to vector<4x4x16xbf16>
    %58 = vector.shape_cast %57 : vector<4x4x16xbf16> to vector<16x16xbf16>
    %59 = vector.extract_strided_slice %53 {offsets = [0, 0, 0], sizes = [1, 16, 20], strides = [1, 1, 1]} : vector<9x16x20xbf16> to vector<1x16x20xbf16>
    %60 = vector.shape_cast %59 : vector<1x16x20xbf16> to vector<16x20xbf16>
    %cst_57 = arith.constant dense<0.000000e+00> : vector<16x20xf32>
    %61 = tpu.matmul %58, %60, %cst_57 {dimension_numbers = #tpu.dot_dimension_numbers<[1], [0], [0], [1], [0, 0, 1, 1], [], []>} : vector<16x16xbf16>, vector<16x20xbf16>, vector<16x20xf32> -> vector<16x20xf32>
    %62 = vector.extract_strided_slice %56 {offsets = [0, 1, 0], sizes = [4, 4, 16], strides = [1, 1, 1]} : vector<6x6x16xbf16> to vector<4x4x16xbf16>
    %63 = vector.shape_cast %62 : vector<4x4x16xbf16> to vector<16x16xbf16>
    %64 = vector.extract_strided_slice %53 {offsets = [1, 0, 0], sizes = [1, 16, 20], strides = [1, 1, 1]} : vector<9x16x20xbf16> to vector<1x16x20xbf16>
    %65 = vector.shape_cast %64 : vector<1x16x20xbf16> to vector<16x20xbf16>
    %cst_58 = arith.constant dense<0.000000e+00> : vector<16x20xf32>
    %66 = tpu.matmul %63, %65, %cst_58 {dimension_numbers = #tpu.dot_dimension_numbers<[1], [0], [0], [1], [0, 0, 1, 1], [], []>} : vector<16x16xbf16>, vector<16x20xbf16>, vector<16x20xf32> -> vector<16x20xf32>
    %67 = arith.addf %61, %66 : vector<16x20xf32>
    %68 = vector.extract_strided_slice %56 {offsets = [0, 2, 0], sizes = [4, 4, 16], strides = [1, 1, 1]} : vector<6x6x16xbf16> to vector<4x4x16xbf16>
    %69 = vector.shape_cast %68 : vector<4x4x16xbf16> to vector<16x16xbf16>
    %70 = vector.extract_strided_slice %53 {offsets = [2, 0, 0], sizes = [1, 16, 20], strides = [1, 1, 1]} : vector<9x16x20xbf16> to vector<1x16x20xbf16>
    %71 = vector.shape_cast %70 : vector<1x16x20xbf16> to vector<16x20xbf16>
    %cst_59 = arith.constant dense<0.000000e+00> : vector<16x20xf32>
    %72 = tpu.matmul %69, %71, %cst_59 {dimension_numbers = #tpu.dot_dimension_numbers<[1], [0], [0], [1], [0, 0, 1, 1], [], []>} : vector<16x16xbf16>, vector<16x20xbf16>, vector<16x20xf32> -> vector<16x20xf32>
    %73 = arith.addf %67, %72 : vector<16x20xf32>
    %74 = vector.extract_strided_slice %56 {offsets = [1, 0, 0], sizes = [4, 4, 16], strides = [1, 1, 1]} : vector<6x6x16xbf16> to vector<4x4x16xbf16>
    %75 = vector.shape_cast %74 : vector<4x4x16xbf16> to vector<16x16xbf16>
    %76 = vector.extract_strided_slice %53 {offsets = [3, 0, 0], sizes = [1, 16, 20], strides = [1, 1, 1]} : vector<9x16x20xbf16> to vector<1x16x20xbf16>
    %77 = vector.shape_cast %76 : vector<1x16x20xbf16> to vector<16x20xbf16>
    %cst_60 = arith.constant dense<0.000000e+00> : vector<16x20xf32>
    %78 = tpu.matmul %75, %77, %cst_60 {dimension_numbers = #tpu.dot_dimension_numbers<[1], [0], [0], [1], [0, 0, 1, 1], [], []>} : vector<16x16xbf16>, vector<16x20xbf16>, vector<16x20xf32> -> vector<16x20xf32>
    %79 = arith.addf %73, %78 : vector<16x20xf32>
    %80 = vector.extract_strided_slice %56 {offsets = [1, 1, 0], sizes = [4, 4, 16], strides = [1, 1, 1]} : vector<6x6x16xbf16> to vector<4x4x16xbf16>
    %81 = vector.shape_cast %80 : vector<4x4x16xbf16> to vector<16x16xbf16>
    %82 = vector.extract_strided_slice %53 {offsets = [4, 0, 0], sizes = [1, 16, 20], strides = [1, 1, 1]} : vector<9x16x20xbf16> to vector<1x16x20xbf16>
    %83 = vector.shape_cast %82 : vector<1x16x20xbf16> to vector<16x20xbf16>
    %cst_61 = arith.constant dense<0.000000e+00> : vector<16x20xf32>
    %84 = tpu.matmul %81, %83, %cst_61 {dimension_numbers = #tpu.dot_dimension_numbers<[1], [0], [0], [1], [0, 0, 1, 1], [], []>} : vector<16x16xbf16>, vector<16x20xbf16>, vector<16x20xf32> -> vector<16x20xf32>
    %85 = arith.addf %79, %84 : vector<16x20xf32>
    %86 = vector.extract_strided_slice %56 {offsets = [1, 2, 0], sizes = [4, 4, 16], strides = [1, 1, 1]} : vector<6x6x16xbf16> to vector<4x4x16xbf16>
    %87 = vector.shape_cast %86 : vector<4x4x16xbf16> to vector<16x16xbf16>
    %88 = vector.extract_strided_slice %53 {offsets = [5, 0, 0], sizes = [1, 16, 20], strides = [1, 1, 1]} : vector<9x16x20xbf16> to vector<1x16x20xbf16>
    %89 = vector.shape_cast %88 : vector<1x16x20xbf16> to vector<16x20xbf16>
    %cst_62 = arith.constant dense<0.000000e+00> : vector<16x20xf32>
    %90 = tpu.matmul %87, %89, %cst_62 {dimension_numbers = #tpu.dot_dimension_numbers<[1], [0], [0], [1], [0, 0, 1, 1], [], []>} : vector<16x16xbf16>, vector<16x20xbf16>, vector<16x20xf32> -> vector<16x20xf32>
    %91 = arith.addf %85, %90 : vector<16x20xf32>
    %92 = vector.extract_strided_slice %56 {offsets = [2, 0, 0], sizes = [4, 4, 16], strides = [1, 1, 1]} : vector<6x6x16xbf16> to vector<4x4x16xbf16>
    %93 = vector.shape_cast %92 : vector<4x4x16xbf16> to vector<16x16xbf16>
    %94 = vector.extract_strided_slice %53 {offsets = [6, 0, 0], sizes = [1, 16, 20], strides = [1, 1, 1]} : vector<9x16x20xbf16> to vector<1x16x20xbf16>
    %95 = vector.shape_cast %94 : vector<1x16x20xbf16> to vector<16x20xbf16>
    %cst_63 = arith.constant dense<0.000000e+00> : vector<16x20xf32>
    %96 = tpu.matmul %93, %95, %cst_63 {dimension_numbers = #tpu.dot_dimension_numbers<[1], [0], [0], [1], [0, 0, 1, 1], [], []>} : vector<16x16xbf16>, vector<16x20xbf16>, vector<16x20xf32> -> vector<16x20xf32>
    %97 = arith.addf %91, %96 : vector<16x20xf32>
    %98 = vector.extract_strided_slice %56 {offsets = [2, 1, 0], sizes = [4, 4, 16], strides = [1, 1, 1]} : vector<6x6x16xbf16> to vector<4x4x16xbf16>
    %99 = vector.shape_cast %98 : vector<4x4x16xbf16> to vector<16x16xbf16>
    %100 = vector.extract_strided_slice %53 {offsets = [7, 0, 0], sizes = [1, 16, 20], strides = [1, 1, 1]} : vector<9x16x20xbf16> to vector<1x16x20xbf16>
    %101 = vector.shape_cast %100 : vector<1x16x20xbf16> to vector<16x20xbf16>
    %cst_64 = arith.constant dense<0.000000e+00> : vector<16x20xf32>
    %102 = tpu.matmul %99, %101, %cst_64 {dimension_numbers = #tpu.dot_dimension_numbers<[1], [0], [0], [1], [0, 0, 1, 1], [], []>} : vector<16x16xbf16>, vector<16x20xbf16>, vector<16x20xf32> -> vector<16x20xf32>
    %103 = arith.addf %97, %102 : vector<16x20xf32>
    %104 = vector.extract_strided_slice %56 {offsets = [2, 2, 0], sizes = [4, 4, 16], strides = [1, 1, 1]} : vector<6x6x16xbf16> to vector<4x4x16xbf16>
    %105 = vector.shape_cast %104 : vector<4x4x16xbf16> to vector<16x16xbf16>
    %106 = vector.extract_strided_slice %53 {offsets = [8, 0, 0], sizes = [1, 16, 20], strides = [1, 1, 1]} : vector<9x16x20xbf16> to vector<1x16x20xbf16>
    %107 = vector.shape_cast %106 : vector<1x16x20xbf16> to vector<16x20xbf16>
    %cst_65 = arith.constant dense<0.000000e+00> : vector<16x20xf32>
    %108 = tpu.matmul %105, %107, %cst_65 {dimension_numbers = #tpu.dot_dimension_numbers<[1], [0], [0], [1], [0, 0, 1, 1], [], []>} : vector<16x16xbf16>, vector<16x20xbf16>, vector<16x20xf32> -> vector<16x20xf32>
    %109 = arith.addf %103, %108 : vector<16x20xf32>
    %c0_66 = arith.constant 0 : index
    %c0_67 = arith.constant 0 : index
    %110 = vector.load %arg7[%c0_66, %c0_67] : memref<1x20xf32, #tpu.memory_space<vmem>>, vector<1x20xf32>
    %111 = vector.broadcast %110 : vector<1x20xf32> to vector<16x20xf32>
    %112 = arith.addf %109, %111 : vector<16x20xf32>
    %113 = tpu.transpose %112, [1, 0] : vector<16x20xf32> -> vector<20x16xf32>
    %c0_68 = arith.constant 0 : index
    %c0_69 = arith.constant 0 : index
    %c0_70 = arith.constant 0 : index
    %114 = vector.load %arg8[%c0_68, %c0_69, %c0_70] : memref<1x20x16xf32, #tpu.memory_space<vmem>>, vector<1x20x16xf32>
    %115 = vector.shape_cast %114 : vector<1x20x16xf32> to vector<20x16xf32>
    %116 = vector.shape_cast %113 : vector<20x16xf32> to vector<1x20x16xf32>
    tpu.vector_store %arg8[%c0_68, %c0_69, %c0_70], %116 {strides = array<i32>} : memref<1x20x16xf32, #tpu.memory_space<vmem>>, vector<1x20x16xf32>,
    return
  }
  func.func @transform_0(%arg0: i32) -> (i32, i32, i32, i32) {
    %c0_i32 = arith.constant 0 : i32
    %c0_i32_0 = arith.constant 0 : i32
    %c0_i32_1 = arith.constant 0 : i32
    %c0_i32_2 = arith.constant 0 : i32
    return %arg0, %c0_i32, %c0_i32_0, %c0_i32_1 : i32, i32, i32, i32
  }
  func.func @transform_1(%arg0: i32) -> (i32, i32, i32) {
    %c0_i32 = arith.constant 0 : i32
    %c0_i32_0 = arith.constant 0 : i32
    %c0_i32_1 = arith.constant 0 : i32
    %c0_i32_2 = arith.constant 0 : i32
    return %c0_i32, %c0_i32_0, %c0_i32_1 : i32, i32, i32
  }
  func.func @transform_2(%arg0: i32) -> (i32, i32) {
    %c0_i32 = arith.constant 0 : i32
    %c0_i32_0 = arith.constant 0 : i32
    %c0_i32_1 = arith.constant 0 : i32
    return %c0_i32, %c0_i32_0 : i32, i32
  }
  func.func @transform_3(%arg0: i32) -> (i32, i32, i32, i32) {
    %c0_i32 = arith.constant 0 : i32
    %c0_i32_0 = arith.constant 0 : i32
    %c0_i32_1 = arith.constant 0 : i32
    %c0_i32_2 = arith.constant 0 : i32
    %c0_i32_3 = arith.constant 0 : i32
    return %c0_i32, %c0_i32_0, %c0_i32_1, %c0_i32_2 : i32, i32, i32, i32
  }
  func.func @transform_4(%arg0: i32) -> (i32, i32, i32) {
    %c0_i32 = arith.constant 0 : i32
    %c0_i32_0 = arith.constant 0 : i32
    %c0_i32_1 = arith.constant 0 : i32
    %c0_i32_2 = arith.constant 0 : i32
    return %c0_i32, %c0_i32_0, %c0_i32_1 : i32, i32, i32
  }
  func.func @transform_5(%arg0: i32) -> (i32, i32, i32) {
    %c0_i32 = arith.constant 0 : i32
    %c0_i32_0 = arith.constant 0 : i32
    %c0_i32_1 = arith.constant 0 : i32
    %c0_i32_2 = arith.constant 0 : i32
    return %c0_i32, %c0_i32_0, %c0_i32_1 : i32, i32, i32
  }
  func.func @transform_6(%arg0: i32) -> (i32, i32) {
    %c0_i32 = arith.constant 0 : i32
    %c0_i32_0 = arith.constant 0 : i32
    %c0_i32_1 = arith.constant 0 : i32
    return %c0_i32, %c0_i32_0 : i32, i32
  }
  func.func @transform_7(%arg0: i32) -> (i32, i32, i32) {
    %c0_i32 = arith.constant 0 : i32
    %c0_i32_0 = arith.constant 0 : i32
    %c0_i32_1 = arith.constant 0 : i32
    return %arg0, %c0_i32, %c0_i32_0 : i32, i32, i32
  }
}

</mosaic_0001>

<bundles_post_ra>
// kernel: ifblock_forward.2
= control target key start
LH: loop header
LB: loop body
LE: loop exit
PB: predicated region body
PF: predicated region fallthrough
CT: control target
= control target key end

     0   :  { %s1198_s12 = smov 0   ;;  %s1448_s0 = inlined_call_operand.vmem [shape: bf16[2,8,8,16], index: 0, kind: input, shape index: {}]   ;;  %s1449_s1 = inlined_call_operand.vmem [shape: bf16[4,16,8], index: 1, kind: input, shape index: {}]   ;;  %s1450_s2 = inlined_call_operand.vmem [shape: f32[2,8], index: 2, kind: input, shape index: {}]   ;;  %s1451_s3 = inlined_call_operand.vmem [shape: bf16[2,8,8,8], index: 3, kind: output, shape index: {}]  }
   0x1 LB: > { %s1011_s13 = sadd.s32 4294967295, %s1175_s12   ;;  %p1015_p0 = scmp.ge.s32.totalorder %s1175_s12, 1  ;;  %s1175_s12 = sphi %s1198_s12, %s13_s12  }
   0x2   : > { %p137_p1 = scmp.lt.s32.totalorder %s1175_s12, 3 }
   0x4   : > { %p138_p2 = pnand %p1015_p0, %p137_p1 }
   0x5   : > { %v1161_v0 = vld [vmem:[%s1449_s1 + $0x10] sm:$0xff] (!%p138_p2)   ;;  %p161_p3 = scmp.lt.s32.totalorder (!%p138_p2), %s1011_s13, 1  ;;  %vm174_vm0 = vcmask (!%p138_p2), 122880   ;;  %vm175_vm1 = vsmask.f32 (!%p138_p2), 256  ;;  %vm172_vm2 = vcmask (!%p138_p2), 125952  }
   0x6   : > { %141 = sbr.rel (%p138_p2) target bundleno = 309 (0x135), region = 32  ;;  %v183_v1 = vld [vmem:[#allocation2 + $0x8] sm:$0x1] (!%p138_p2)  ;;  %1108 = vmatprep.subr.bf16.mxu0 (!%p138_p2), %v1161_v0  ;;  %vm1211_vm3 = vmand (!%p138_p2), %vm174_vm0, %vm175_vm1  ;;  %v186_v3 = vld [vmem:[#allocation2 + $0x10] sm:$0x1] (!%p138_p2)  ;;  %v1177_v12 = vmov (!%p138_p2), 0  }
   0x7   : > { %v189_v4 = vld [vmem:[#allocation2 + $0x18] sm:$0x1] (!%p138_p2)  ;;  %1109 = vmatpush3.bf16.msra.mxu0 (!%p138_p2), %v1161_v0  ;;  %v184_v5 = vsel (!%p138_p2), %vm1211_vm3, 0, %v183_v1  ;;  %v187_v6 = vsel (!%p138_p2), %vm1211_vm3, 0, %v186_v3  ;;  %vm297_vm4 = vsmask.f32 (!%p138_p2), 7938 }
   0x8   : > { %v190_v7 = vsel (!%p138_p2), %vm1211_vm3, 0, %v189_v4  ;;  %v1164_v8 = vld [vmem:[%s1449_s1 + $0x8] sm:$0xff] (!%p138_p2)   ;;  %185 = vst [vmem:[#allocation2 + $0x8] sm:$0x1] (!%p138_p2), %v184_v5  ;;  %188 = vst [vmem:[#allocation2 + $0x10] sm:$0x1] (!%p138_p2), %v187_v6 }
   0x9   : > { %191 = vst [vmem:[#allocation2 + $0x18] sm:$0x1] (!%p138_p2), %v190_v7  ;;  %v192_v9 = vld [vmem:[#allocation2 + $0x20] sm:$0x1] (!%p138_p2)  ;;  %1088 = vmatprep.subr.bf16.mxu1 (!%p138_p2), %v1164_v8  ;;  %v195_v11 = vld [vmem:[#allocation2 + $0x28] sm:$0x1] (!%p138_p2)  ;;  %vm1252_vm5 = vmand (!%p138_p2), %vm172_vm2, %vm297_vm4 }
   0xa   : > { %v193_v10 = vsel (!%p138_p2), %vm1211_vm3, 0, %v192_v9  ;;  %173 = vst.msk [vmem:[#allocation2] sm:$0xf] (!%p138_p2), %vm172_vm2, %v1177_v12  ;;  %v1238_v13 = vld [vmem:[%s1449_s1] sm:$0xff] (!%p138_p2)   ;;  %1089 = vmatpush3.bf16.msra.mxu1 (!%p138_p2), %v1164_v8  ;;  %v198_v26 = vld [vmem:[#allocation2 + $0x30] sm:$0x1] (!%p138_p2) }
   0xb   : > { %194 = vst [vmem:[#allocation2 + $0x20] sm:$0x1] (!%p138_p2), %v193_v10  ;;  %1098 = vmatprep.subr.bf16.mxu1 (!%p138_p2), %v1238_v13  ;;  %v196_v29 = vsel (!%p138_p2), %vm1211_vm3, 0, %v195_v11  ;;  %v199_v30 = vsel (!%p138_p2), %vm1211_vm3, 0, %v198_v26  ;;  %v177_v47 = vld [vmem:[#allocation2 + $0x4] sm:$0x1] (!%p138_p2) }
   0xc   : > { %197 = vst [vmem:[#allocation2 + $0x28] sm:$0x1] (!%p138_p2), %v196_v29  ;;  %200 = vst [vmem:[#allocation2 + $0x30] sm:$0x1] (!%p138_p2), %v199_v30  ;;  %v178_v53 = vsel (!%p138_p2), %vm1211_vm3, 0, %v177_v47  ;;  %v1275_v61 = vld [vmem:[%s1449_s1 + $0x18] sm:$0xff] (!%p138_p2)  }
   0xd   : > { %s1459_s13 = smov (!%p161_p3, %s1011_s13), 1  ;;  %v302_v54 = vld [vmem:[#allocation2 + $0xc] sm:$0x1]  ;;  %179 = vst [vmem:[#allocation2 + $0x4] sm:$0x1] %v178_v53  ;;  %1118 = vmatprep.subr.bf16.mxu0 %v1275_v61  ;;  %vm503_vm6 = vcmask 130048  }
   0xe   : > { %s1066_s18 = sshll.u32 %s1459_s13, 5  ;;  %v308_v59 = vld [vmem:[#allocation2 + $0x14] sm:$0x1]  ;;  %v314_v60 = vld [vmem:[#allocation2 + $0x1c] sm:$0x1]  ;;  %vm947_vm12 = vcmask 60416  }
   0xf   : > { %s1230_s21 = scalar_lea.vmem %s1448_s0, %s1066_s18  ;;  %v299_v40 = vld [vmem:[#allocation2 + $0x8] sm:$0xf]  ;;  %v305_v41 = vld [vmem:[#allocation2 + $0x10] sm:$0xf]  ;;  %v320_v3 = vld [vmem:[#allocation2 + $0x24] sm:$0x1]  ;;  %s1427_s5 = scalar_lea.vmem %s1451_s3, %s1066_s18 }
  0x10   : > { %v207_v14 = vld [vmem:[%s1230_s21] sm:$0xf]  ;;  %v208_v15 = vld [vmem:[%s1230_s21 + $0x4] sm:$0xf]  ;;  %v209_v16 = vld [vmem:[%s1230_s21 + $0x8] sm:$0xf] }
  0x11   : > { %v216_v17 = vshrl.u32 %v207_v14, 16  ;;  %v219_v18 = vshll.u32 %v207_v14, 16  ;;  %v224_v19 = vshrl.u32 %v208_v15, 16  ;;  %v227_v20 = vshll.u32 %v208_v15, 16  ;;  %v210_v21 = vld [vmem:[%s1230_s21 + $0xc] sm:$0xf] }
  0x12   : > { %v232_v22 = vshrl.u32 %v209_v16, 16  ;;  %v235_v23 = vshll.u32 %v209_v16, 16  ;;  %v240_v24 = vshrl.u32 %v210_v21, 16  ;;  %v243_v25 = vshll.u32 %v210_v21, 16  ;;  %v211_v31 = vld [vmem:[%s1230_s21 + $0x10] sm:$0xf] }
  0x13   : > { %v218_v27 = vrot.slane %v216_v17, 7  ;;  %v226_v28 = vrot.slane %v224_v19, 7  ;;  %v212_v35 = vld [vmem:[%s1230_s21 + $0x14] sm:$0xf]  ;;  %v248_v36 = vshrl.u32 %v211_v31, 16  ;;  %v251_v37 = vshll.u32 %v211_v31, 16 }
  0x14   : > { %v234_v32 = vrot.slane %v232_v22, 7  ;;  %v242_v34 = vrot.slane %v240_v24, 7  ;;  %v311_v42 = vld [vmem:[#allocation2 + $0x18] sm:$0xf]  ;;  %v256_v46 = vshrl.u32 %v212_v35, 16  ;;  %v259_v52 = vshll.u32 %v212_v35, 16 }
  0x15   : > { %v221_v38 = vor.u32 %v219_v18, %v218_v27  ;;  %v229_v39 = vor.u32 %v227_v20, %v226_v28  ;;  %v1257_v45 = vrot.slane %v248_v36, 7  ;;  %v180_v48 = vld [vmem:[#allocation2] sm:$0x1]  ;;  %v222_v63 = vrot.slane %v218_v27, 4  ;;  %v323_v6 = vld [vmem:[#allocation2 + $0x28] sm:$0xf] }
  0x16   : > { %v237_v43 = vor.u32 %v235_v23, %v234_v32  ;;  %v245_v44 = vor.u32 %v243_v25, %v242_v34  ;;  %v317_v51 = vld [vmem:[#allocation2 + $0x20] sm:$0xf]  ;;  %v1270_v58 = vrot.slane %v256_v46, 7  ;;  %v181_v62 = vsel %vm1211_vm3, 0, %v180_v48  ;;  %v329_v7 = vld [vmem:[#allocation2 + $0x30] sm:$0xf] }
  0x17   : > { %v300_v49 = vsel %vm1252_vm5, %v221_v38, %v299_v40  ;;  %v306_v50 = vsel %vm1252_vm5, %v229_v39, %v305_v41  ;;  %v253_v57 = vor.u32 %v251_v37, %v1257_v45  ;;  %v230_v0 = vrot.slane %v226_v28, 4  ;;  %182 = vst [vmem:[#allocation2] sm:$0x1] %v181_v62  ;;  %v201_v15 = vld [vmem:[#allocation2 + $0x38] sm:$0x1] }
  0x18   : > { %301 = vst [vmem:[#allocation2 + $0x8] sm:$0xf] %v300_v49  ;;  %307 = vst [vmem:[#allocation2 + $0x10] sm:$0xf] %v306_v50  ;;  %v312_v55 = vsel %vm1252_vm5, %v237_v43, %v311_v42  ;;  %v318_v56 = vsel %vm1252_vm5, %v245_v44, %v317_v51  ;;  %v238_v1 = vrot.slane %v234_v32, 4  ;;  %v261_v4 = vor.u32 %v259_v52, %v1270_v58 }
  0x19   : > { %313 = vst [vmem:[#allocation2 + $0x18] sm:$0xf] %v312_v55  ;;  %319 = vst [vmem:[#allocation2 + $0x20] sm:$0xf] %v318_v56  ;;  %v246_v5 = vrot.slane %v242_v34, 4  ;;  %v303_v8 = vsel %vm1211_vm3, %v222_v63, %v302_v54  ;;  %v309_v9 = vsel %vm1211_vm3, %v230_v0, %v308_v59  ;;  %v324_v11 = vsel %vm1252_vm5, %v253_v57, %v323_v6 }
  0x1a   : > { %v315_v10 = vsel %vm1211_vm3, %v238_v1, %v314_v60  ;;  %v330_v12 = vsel %vm1252_vm5, %v261_v4, %v329_v7  ;;  %304 = vst [vmem:[#allocation2 + $0xc] sm:$0x1] %v303_v8  ;;  %310 = vst [vmem:[#allocation2 + $0x14] sm:$0x1] %v309_v9  ;;  %v202_v16 = vsel %vm1211_vm3, 0, %v201_v15  ;;  %v254_v28 = vrot.slane %v1257_v45, 4 }
  0x1b   : > { %316 = vst [vmem:[#allocation2 + $0x1c] sm:$0x1] %v315_v10  ;;  %v321_v14 = vsel %vm1211_vm3, %v246_v5, %v320_v3  ;;  %325 = vst [vmem:[#allocation2 + $0x28] sm:$0xf] %v324_v11  ;;  %v204_v17 = vld [vmem:[#allocation2 + $0x40] sm:$0x1] }
  0x1c   : > { %331 = vst [vmem:[#allocation2 + $0x30] sm:$0xf] %v330_v12  ;;  %322 = vst [vmem:[#allocation2 + $0x24] sm:$0x1] %v321_v14  ;;  %v205_v18 = vsel %vm1211_vm3, 0, %v204_v17  ;;  %v262_v29 = vrot.slane %v1270_v58, 4 }
  0x1d   : > { %203 = vst [vmem:[#allocation2 + $0x38] sm:$0x1] %v202_v16  ;;  %v1298_v19 = vld [vmem:[%s1230_s21 + $0x18] sm:$0xf]  ;;  %vm367_vm7 = vsmask.f32 3328 }
  0x1e   : > { %206 = vst [vmem:[#allocation2 + $0x40] sm:$0x1] %v205_v18  ;;  %vm368_vm8 = vsmask.f32 7440  ;;  %v264_v27 = vshrl.u32 %v1298_v19, 16  ;;  %v267_v47 = vshll.u32 %v1298_v19, 16 }
  0x1f   : > { %v1300_v20 = vld [vmem:[#allocation2 + $0x8] sm:$0xf]  ;;  %v1302_v21 = vld [vmem:[#allocation2 + $0x10] sm:$0xf]  ;;  %v348_v32 = vld [vmem:[#allocation2 + $0x4] sm:$0x1] }
  0x20   : > { %v1304_v22 = vld [vmem:[#allocation2 + $0x18] sm:$0xf]  ;;  %v399_v23 = vshrl.u32 %v1302_v21, 16  ;;  %v402_v24 = vshll.u32 %v1302_v21, 16  ;;  %v1042_v25 = vcombine.low %v1300_v20, %v1302_v21  ;;  %v1310_v26 = vld [vmem:[#allocation2 + $0x20] sm:$0xf]  ;;  %vm1341_vm9 = vmor %vm367_vm7, %vm368_vm8 }
  0x21   : > { %v385_v34 = vshrl.u32 %v1300_v20, 16  ;;  %v388_v35 = vshll.u32 %v1300_v20, 16  ;;  %v1043_v36 = vcombine.low %v1304_v22, %v1310_v26  ;;  %v1320_v37 = vld [vmem:[#allocation2] sm:$0xf]  ;;  %v413_v38 = vshrl.u32 %v1304_v22, 16 }
  0x22   : > { %v401_v30 = vrot.slane %v399_v23, 4  ;;  %v404_v31 = vrot.slane %v402_v24, 5  ;;  %1110 = vmatprep.mubr.msk.bf16.mxu0 %vm503_vm6, %v1042_v25  ;;  %v1323_v39 = vld [vmem:[#allocation2 + $0x28] sm:$0xf]  ;;  %v350_v41 = vld [vmem:[#allocation2 + $0xc] sm:$0x1] }
  0x23   : > { %v1325_v40 = vld [vmem:[#allocation2 + $0x30] sm:$0xf]  ;;  %v427_v42 = vshrl.u32 %v1310_v26, 16  ;;  %v430_v43 = vshll.u32 %v1310_v26, 16  ;;  %1111 = vmatmul.mubr.msk.bf16.vlgmr.msra.gmra.mrb[0].mxu0 %vm503_vm6, %v1043_v36  ;;  %v352_v44 = vld [vmem:[#allocation2 + $0x14] sm:$0x1] }
  0x24   : > { %v380_v46 = vshll.u32 %v348_v32, 16  ;;  %v1044_v48 = vcombine.low %v1323_v39, %v1325_v40  ;;  %v354_v49 = vld [vmem:[#allocation2 + $0x1c] sm:$0x1]  ;;  %v371_v50 = vshrl.u32 %v1320_v37, 16  ;;  %v374_v51 = vshll.u32 %v1320_v37, 16  ;;  %1119 = vmatpush3.bf16.msra.mxu0 %v1275_v61 }
  0x25   : > { %v405_v52 = vor.u32 %v404_v31, %v401_v30  ;;  %v441_v53 = vshrl.u32 %v1323_v39, 16  ;;  %v387_v54 = vrot.slane %v385_v34, 4  ;;  %v390_v55 = vrot.slane %v388_v35, 5  ;;  %v214_v8 = vld [vmem:[%s1230_s21 + $0x1c] sm:$0xf] }
  0x26   : > { %v394_v56 = vshll.u32 %v350_v41, 16  ;;  %1114 = vmatprep.mubr.msk.bf16.mxu0 %vm503_vm6, %v1044_v48  ;;  %v373_v57 = vrot.slane %v371_v50, 4  ;;  %v376_v59 = vrot.slane %v374_v51, 5  ;;  %v408_v60 = vshll.u32 %v352_v44, 16  ;;  %v335_v25 = vld [vmem:[#allocation2 + $0x38] sm:$0xf] }
  0x27   : > { %v415_v62 = vrot.slane %v413_v38, 4  ;;  %v391_v63 = vor.u32 %v390_v55, %v387_v54  ;;  %v416_v1 = vshll.u32 %v1304_v22, 16  ;;  %v422_v3 = vshll.u32 %v354_v49, 16  ;;  %v326_v30 = vld [vmem:[#allocation2 + $0x2c] sm:$0x1] }
  0x28   : > { %v396_v0 = vrot.slane %v394_v56, 5  ;;  %v377_v4 = vor.u32 %v376_v59, %v373_v57  ;;  %v382_v5 = vrot.slane %v380_v46, 5  ;;  %v406_v6 = vrot.slane %v405_v52, 4  ;;  %v356_v31 = vld [vmem:[#allocation2 + $0x24] sm:$0x1] }
  0x29   : > { %v410_v7 = vrot.slane %v408_v60, 5  ;;  %v444_v9 = vshll.u32 %v1323_v39, 16  ;;  %v455_v10 = vshrl.u32 %v1325_v40, 16  ;;  %v392_v11 = vrot.slane %v391_v63, 4  ;;  %v332_v44 = vld [vmem:[#allocation2 + $0x34] sm:$0x1] }
  0x2a   : > { %v418_v12 = vrot.slane %v416_v1, 5  ;;  %v458_v14 = vshll.u32 %v1325_v40, 16  ;;  %v378_v15 = vrot.slane %v377_v4, 4  ;;  %v429_v16 = vrot.slane %v427_v42, 4  ;;  %v341_v48 = vld [vmem:[#allocation2 + $0x40] sm:$0xf] }
  0x2b   : > { %v266_v17 = vrot.slane %v264_v27, 7  ;;  %v1351_v18 = vsel %vm1341_vm9, %v392_v11, %v396_v0  ;;  %v424_v23 = vrot.slane %v422_v3, 5  ;;  %v272_v24 = vshrl.u32 %v214_v8, 16  ;;  %v338_v51 = vld [vmem:[#allocation2 + $0x3c] sm:$0x1] }
  0x2c   : > { %v419_v19 = vor.u32 %v418_v12, %v415_v62  ;;  %v383_v32 = vsel %vm1341_vm9, %v378_v15, %v382_v5  ;;  %v1357_v34 = vsel %vm1341_vm9, %v406_v6, %v410_v7  ;;  %v432_v35 = vrot.slane %v430_v43, 5  ;;  %v344_v62 = vld [vmem:[#allocation2 + $0x44] sm:$0x1] }
  0x2d   : > { %v269_v36 = vor.u32 %v267_v47, %v266_v17  ;;  %v1022_v38 = vcombine.low %v383_v32, %v1351_v18  ;;  %v274_v41 = vrot.slane %v272_v24, 7  ;;  %v275_v42 = vshll.u32 %v214_v8, 16 }
  0x2e   : > { %v420_v27 = vrot.slane %v419_v19, 4  ;;  %v327_v49 = vsel %vm1211_vm3, %v254_v28, %v326_v30  ;;  %v443_v50 = vrot.slane %v441_v53, 4  ;;  %v446_v52 = vrot.slane %v444_v9, 5 }
  0x2f   : > { %v336_v46 = vsel %vm1252_vm5, %v269_v36, %v335_v25  ;;  %1090 = vmatprep.mubr.msk.bf16.mxu1 %vm503_vm6, %v1022_v38  ;;  %v277_v47 = vor.u32 %v275_v42, %v274_v41  ;;  %328 = vst [vmem:[#allocation2 + $0x2c] sm:$0x1] %v327_v49  ;;  %v270_v54 = vrot.slane %v266_v17, 4  ;;  %v436_v55 = vshll.u32 %v356_v31, 16 }
  0x30   : > { %v1368_v43 = vsel %vm1341_vm9, %v420_v27, %v424_v23  ;;  %337 = vst [vmem:[#allocation2 + $0x38] sm:$0xf] %v336_v46  ;;  %v333_v28 = vsel %vm1211_vm3, %v262_v29, %v332_v44  ;;  %v457_v53 = vrot.slane %v455_v10, 4  ;;  %v433_v56 = vor.u32 %v432_v35, %v429_v16 }
  0x31   : > { %v1023_v45 = vcombine.low %v1357_v34, %v1368_v43  ;;  %v342_v57 = vsel %vm1252_vm5, %v277_v47, %v341_v48  ;;  %334 = vst [vmem:[#allocation2 + $0x34] sm:$0x1] %v333_v28  ;;  %v339_v59 = vsel %vm1211_vm3, %v270_v54, %v338_v51  ;;  %v460_v60 = vrot.slane %v458_v14, 5 }
  0x32   : > { %343 = vst [vmem:[#allocation2 + $0x40] sm:$0xf] %v342_v57  ;;  %340 = vst [vmem:[#allocation2 + $0x3c] sm:$0x1] %v339_v59  ;;  %v278_v63 = vrot.slane %v274_v41, 4  ;;  %v447_v58 = vor.u32 %v446_v52, %v443_v50  ;;  %v434_v33 = vrot.slane %v433_v56, 4  ;;  %v1031_v48 = vcombine.low %v1320_v37, %v1300_v20 }
  0x33   : > { %1091 = vmatmul.mubr.msk.bf16.vlgmr.msra.gmra.mrb[0].mxu1 %vm503_vm6, %v1023_v45  ;;  %v461_v29 = vor.u32 %v460_v60, %v457_v53  ;;  %v438_v1 = vrot.slane %v436_v55, 5  ;;  %v1032_v20 = vcombine.low %v1302_v21, %v1304_v22  ;;  %v1033_v54 = vcombine.low %v1310_v26, %v1323_v39  ;;  %v1062_v22 = vld [vmem:[%s1450_s2] ss:$0 sm:$0xff]  ;;  %v1063_v59 = vld [vmem:[%s1450_s2 + $0x1] ss:$0 sm:$0xff] }
  0x34   : > { %1099 = vmatpush3.bf16.msra.mxu1 %v1238_v13  ;;  %v345_v0 = vsel %vm1211_vm3, %v278_v63, %v344_v62  ;;  %v448_v7 = vrot.slane %v447_v58, 4  ;;  %v1053_v13 = vcombine.low %v1351_v18, %v1357_v34 }
  0x35   : > { %346 = vst [vmem:[#allocation2 + $0x44] sm:$0x1] %v345_v0  ;;  %v462_v10 = vrot.slane %v461_v29, 4  ;;  %v439_v11 = vsel %vm1341_vm9, %v434_v33, %v438_v1 }
  0x36   : > { %v358_v4 = vld [vmem:[#allocation2 + $0x2c] sm:$0x1]  ;;  %v1054_v46 = vcombine.low %v1368_v43, %v439_v11 }
  0x37   : > { %v361_v3 = vld [vmem:[#allocation2 + $0x38] sm:$0xf]  ;;  %v450_v8 = vshll.u32 %v358_v4, 16 }
  0x38   : > { %v469_v5 = vshrl.u32 %v361_v3, 16  ;;  %v472_v6 = vshll.u32 %v361_v3, 16  ;;  %v360_v9 = vld [vmem:[#allocation2 + $0x34] sm:$0x1]  ;;  %v1034_v55 = vcombine.low %v1325_v40, %v361_v3 }
  0x39   : > { %v363_v12 = vld [vmem:[#allocation2 + $0x40] sm:$0xf]  ;;  %v452_v2 = vrot.slane %v450_v8, 5  ;;  %v362_v14 = vld [vmem:[#allocation2 + $0x3c] sm:$0x1]  ;;  %v464_v15 = vshll.u32 %v360_v9, 16 }
  0x3a   : > { %v1045_v16 = vcombine.low %v361_v3, %v363_v12  ;;  %v785_v17 = vshrl.u32 %v363_v12, 16  ;;  %v788_v19 = vshll.u32 %v363_v12, 16  ;;  %v471_v23 = vrot.slane %v469_v5, 4 }
  0x3b   : > { %v453_v24 = vsel %vm1341_vm9, %v448_v7, %v452_v2  ;;  %v466_v25 = vrot.slane %v464_v15, 5  ;;  %v474_v30 = vrot.slane %v472_v6, 5  ;;  %v478_v31 = vshll.u32 %v362_v14, 16 }
  0x3c   : > { %1115 = vmatmul.mubr.msk.bf16.gmra.mrb[4].mxu0 %vm503_vm6, %v1045_v16  ;;  %v787_v32 = vrot.slane %v785_v17, 4  ;;  %v790_v35 = vrot.slane %v788_v19, 5  ;;  %v1024_v36 = vcombine.low %v439_v11, %v453_v24  ;;  %v364_v18 = vld [vmem:[#allocation2 + $0x44] sm:$0x1] }
  0x3d   : > { %1120 = vmatprep.mubr.msk.bf16.mxu0 %vm503_vm6, %v1053_v13  ;;  %v475_v34 = vor.u32 %v474_v30, %v471_v23  ;;  %v480_v27 = vrot.slane %v478_v31, 5  ;;  %v794_v38 = vshll.u32 %v364_v18, 16  ;;  %v467_v42 = vsel %vm1341_vm9, %v462_v10, %v466_v25 }
  0x3e   : > { %1094 = vmatprep.mubr.msk.bf16.mxu1 %vm503_vm6, %v1024_v36  ;;  %v791_v41 = vor.u32 %v790_v35, %v787_v32  ;;  %v1055_v50 = vcombine.low %v453_v24, %v467_v42 }
  0x3f   : > { %v476_v44 = vrot.slane %v475_v34, 4  ;;  %v796_v47 = vrot.slane %v794_v38, 5 }
  0x40   : > { %v792_v51 = vrot.slane %v791_v41, 4 }
  0x41   : > { %v481_v49 = vsel %vm1341_vm9, %v476_v44, %v480_v27 }
  0x42   : > { %v1025_v52 = vcombine.low %v467_v42, %v481_v49  ;;  %v797_v43 = vsel %vm1341_vm9, %v792_v51, %v796_v47 }
  0x43   : > { %v1056_v37 = vcombine.low %v481_v49, %v797_v43 }
  0x44   : > { %1121 = vmatmul.mubr.msk.bf16.vlgmr.msra.gmra.mrb[0].mxu0 %vm503_vm6, %v1054_v46  ;;  %1095 = vmatmul.mubr.msk.bf16.gmra.mrb[4].mxu1 %vm503_vm6, %v1025_v52 }
  0x45   : > { %1124 = vmatprep.mubr.msk.bf16.mxu0 %vm503_vm6, %v1055_v50  ;;  %1100 = vmatprep.mubr.msk.bf16.mxu1 %vm503_vm6, %v1031_v48 }
  0x4c   : > { %1125 = vmatmul.mubr.msk.bf16.gmra.mrb[4].mxu0 %vm503_vm6, %v1056_v37  ;;  %1101 = vmatmul.mubr.msk.bf16.vlgmr.msra.gmra.mrb[0].mxu1 %vm503_vm6, %v1032_v20 }
  0x4d   : > { %1104 = vmatprep.mubr.msk.bf16.mxu1 %vm503_vm6, %v1033_v54 }
  0x54   : > { %1105 = vmatmul.mubr.msk.bf16.gmra.mrb[4].mxu1 %vm503_vm6, %v1034_v55 }
 0x117   : > { %v1122_v45 = vpop.f32.mrb[0].mxu0 }
 0x118   : > { %v858_v61 = vpop.f32.mrb[1].mxu0 }
 0x119   : > { %v1123_v28 = vpop.f32.mrb[2].mxu0 }
 0x11a   : > { %v861_v53 = vpop.f32.mrb[3].mxu0 }
 0x11f   : > { %v1126_v56 = vpop.f32.mrb[4].mxu0  ;;  %v1102_v21 = vpop.f32.mrb[0].mxu1 }
 0x120   : > { %v1128_v26 = vadd.f32 %v1122_v45, %v1102_v21  ;;  %v874_v39 = vpop.f32.mrb[5].mxu0  ;;  %v653_v57 = vpop.f32.mrb[1].mxu1 }
 0x121   : > { %v1129_v40 = vadd.f32 %v858_v61, %v653_v57  ;;  %v1127_v60 = vpop.f32.mrb[6].mxu0  ;;  %v1103_v62 = vpop.f32.mrb[2].mxu1 }
 0x122   : > { %v904_v63 = vadd.f32 %v1128_v26, %v1062_v22  ;;  %v1130_v58 = vadd.f32 %v1123_v28, %v1103_v62  ;;  %v877_v29 = vpop.f32.mrb[7].mxu0  ;;  %v656_v0 = vpop.f32.mrb[3].mxu1 }
 0x123   : > { %v902_v33 = vadd.f32 %v1129_v40, %v1062_v22  ;;  %v1131_v1 = vadd.f32 %v861_v53, %v656_v0 }
 0x124   : > { %vm912_vm10 = vcmp.ge.f32.partialorder %v904_v63, 0.0  ;;  %v925_v3 = vmul.f32 %v1063_v59, %v904_v63  ;;  %v905_v4 = vadd.f32 %v1130_v58, %v1062_v22 }
 0x125   : > { %vm910_vm11 = vcmp.ge.f32.partialorder %v902_v33, 0.0  ;;  %v923_v5 = vmul.f32 %v1063_v59, %v902_v33  ;;  %v903_v6 = vadd.f32 %v1131_v1, %v1062_v22 }
 0x126   : > { %v933_v7 = vsel %vm912_vm10, %v904_v63, %v925_v3  ;;  %vm913_vm13 = vcmp.ge.f32.partialorder %v905_v4, 0.0  ;;  %v926_v8 = vmul.f32 %v1063_v59, %v905_v4 }
 0x127   : > { %v941_v9 = vpack.c.bf16 %v933_v7, %v933_v7  ;;  %v931_v10 = vsel %vm910_vm11, %v902_v33, %v923_v5  ;;  %vm911_vm14 = vcmp.ge.f32.partialorder %v903_v6, 0.0  ;;  %v924_v11 = vmul.f32 %v1063_v59, %v903_v6  ;;  %v1106_v13 = vpop.f32.mrb[4].mxu1 }
 0x128   : > { %v939_v12 = vpack.c.bf16 %v931_v10, %v931_v10  ;;  %v934_v2 = vsel %vm913_vm13, %v905_v4, %v926_v8  ;;  %v1132_v14 = vadd.f32 %v1126_v56, %v1106_v13  ;;  %v669_v15 = vpop.f32.mrb[5].mxu1 }
 0x129   : > { %950 = vst.msk [vmem:[%s1427_s5 + $0x8] sm:$0xf] %vm947_vm12, %v941_v9  ;;  %v942_v16 = vpack.c.bf16 %v934_v2, %v934_v2  ;;  %v932_v17 = vsel %vm911_vm14, %v903_v6, %v924_v11  ;;  %v1133_v19 = vadd.f32 %v874_v39, %v669_v15  ;;  %v1107_v23 = vpop.f32.mrb[6].mxu1 }
 0x12a   : > { %948 = vst.msk [vmem:[%s1427_s5] sm:$0xf] %vm947_vm12, %v939_v12  ;;  %v940_v24 = vpack.c.bf16 %v932_v17, %v932_v17  ;;  %v908_v25 = vadd.f32 %v1132_v14, %v1062_v22  ;;  %v1134_v30 = vadd.f32 %v1127_v60, %v1107_v23  ;;  %v672_v31 = vpop.f32.mrb[7].mxu1 }
 0x12b   : > { %951 = vst.msk [vmem:[%s1427_s5 + $0xc] sm:$0xf] %vm947_vm12, %v942_v16  ;;  %v906_v32 = vadd.f32 %v1133_v19, %v1062_v22  ;;  %v1135_v35 = vadd.f32 %v877_v29, %v672_v31 }
 0x12c   : > { %949 = vst.msk [vmem:[%s1427_s5 + $0x4] sm:$0xf] %vm947_vm12, %v940_v24  ;;  %vm916_vm15 = vcmp.ge.f32.partialorder %v908_v25, 0.0  ;;  %v929_v36 = vmul.f32 %v1063_v59, %v908_v25  ;;  %v909_v18 = vadd.f32 %v1134_v30, %v1062_v22 }
 0x12d   : > { %vm914_vm0 = vcmp.ge.f32.partialorder %v906_v32, 0.0  ;;  %v927_v34 = vmul.f32 %v1063_v59, %v906_v32  ;;  %v907_v27 = vadd.f32 %v1135_v35, %v1062_v22 }
 0x12e   : > { %v937_v38 = vsel %vm916_vm15, %v908_v25, %v929_v36  ;;  %vm917_vm1 = vcmp.ge.f32.partialorder %v909_v18, 0.0  ;;  %v930_v41 = vmul.f32 %v1063_v59, %v909_v18 }
 0x12f   : > { %v945_v42 = vpack.c.bf16 %v937_v38, %v937_v38  ;;  %v935_v44 = vsel %vm914_vm0, %v906_v32, %v927_v34  ;;  %vm915_vm2 = vcmp.ge.f32.partialorder %v907_v27, 0.0  ;;  %v928_v46 = vmul.f32 %v1063_v59, %v907_v27 }
 0x130   : > { %v943_v48 = vpack.c.bf16 %v935_v44, %v935_v44  ;;  %v938_v49 = vsel %vm917_vm1, %v909_v18, %v930_v41 }
 0x131   : > { %954 = vst.msk [vmem:[%s1427_s5 + $0x18] sm:$0xf] %vm947_vm12, %v945_v42  ;;  %v946_v50 = vpack.c.bf16 %v938_v49, %v938_v49  ;;  %v936_v51 = vsel %vm915_vm2, %v907_v27, %v928_v46 }
 0x132   : > { %952 = vst.msk [vmem:[%s1427_s5 + $0x10] sm:$0xf] %vm947_vm12, %v943_v48  ;;  %v944_v47 = vpack.c.bf16 %v936_v51, %v936_v51 }
 0x133   : > { %955 = vst.msk [vmem:[%s1427_s5 + $0x1c] sm:$0xf] %vm947_vm12, %v946_v50 }
 0x134   : > { %953 = vst.msk [vmem:[%s1427_s5 + $0x14] sm:$0xf] %vm947_vm12, %v944_v47 }
 0x135 PF: > { %s13_s12 = sadd.s32 1, %s1175_s12  }
 0x136   : > { %p10_p4 = scmp.ge.s32.totalorder %s13_s12, 4  }
 0x138   :  { %12 = sbr.rel (!%p10_p4) target bundleno = 1 (0x1), region = 66 }

// kernel: ifblock_forward.3
= control target key start
LH: loop header
LB: loop body
LE: loop exit
PB: predicated region body
PF: predicated region fallthrough
CT: control target
= control target key end

     0   :  { %s3216_s24 = smov 0   ;;  %s3858_s0 = inlined_call_operand.vmem [shape: bf16[2,4,4,32], index: 0, kind: input, shape index: {}]   ;;  %s3859_s1 = inlined_call_operand.vmem [shape: bf16[4,32,16], index: 1, kind: input, shape index: {}]   ;;  %s3860_s2 = inlined_call_operand.vmem [shape: f32[2,16], index: 2, kind: input, shape index: {}]   ;;  %s3861_s3 = inlined_call_operand.vmem [shape: bf16[8,9,16,16], index: 3, kind: input, shape index: {}]   ;;  %s3862_s4 = inlined_call_operand.vmem [shape: f32[8,2,16], index: 4, kind: input, shape index: {}]   ;;  %s3863_s5 = inlined_call_operand.vmem [shape: bf16[9,16,20], index: 5, kind: input, shape index: {}]   ;;  %s3864_s6 = inlined_call_operand.vmem [shape: f32[1,20], index: 6, kind: input, shape index: {}]   ;;  %s3865_s7 = inlined_call_operand.vmem [shape: f32[2,20,16], index: 7, kind: output, shape index: {}]  }
   0x1 LB: > { %s2796_s25 = sadd.s32 4294967295, %s3160_s24   ;;  %p2800_p0 = scmp.ge.s32.totalorder %s3160_s24, 1  ;;  %s3160_s24 = sphi %s3216_s24, %s17_s24  }
   0x2   : > { %p237_p1 = scmp.lt.s32.totalorder %s3160_s24, 3 }
   0x4   : > { %p238_p2 = pnand %p2800_p0, %p237_p1 }
   0x5   : > { %v3106_v0 = vld [vmem:[%s3859_s1 + $0x10] sm:$0xff] (!%p238_p2)   ;;  %v3170_v1 = vmov (!%p238_p2), 0.0   ;;  %v3107_v2 = vld [vmem:[%s3859_s1] sm:$0xff] (!%p238_p2)   ;;  %v3108_v3 = vld [vmem:[%s3859_s1 + $0x18] sm:$0xff] (!%p238_p2)   ;;  %vm3171_vm0 = vmmov (!%p238_p2), 0   ;;  %p269_p3 = scmp.lt.s32.totalorder (!%p238_p2), %s2796_s25, 1  ;;  %v448_v52 = vlaneseq (!%p238_p2) }
   0x6   : > { %241 = sbr.rel (%p238_p2) target bundleno = 1020 (0x3fc), region = 48  ;;  %2935 = vmatprep.subr.bf16.mxu0 (!%p238_p2), %v3170_v1  ;;  %2943 = vmatprep.subr.bf16.mxu1 (!%p238_p2), %v3170_v1  ;;  %v3109_v4 = vld [vmem:[%s3859_s1 + $0x8] sm:$0xff] (!%p238_p2)   ;;  %vm280_vm1 = vcmask (!%p238_p2), 256000   ;;  %vm281_vm2 = vsmask.f32 (!%p238_p2), 2304  ;;  %vm286_vm3 = vcmask (!%p238_p2), 253952  }
   0x7   : > { %2936 = vmatpush3.bf16.msra.mxu0 (!%p238_p2), %v3106_v0  ;;  %2947 = vmatprep.mubr.msk.bf16.mxu1 (!%p238_p2), %vm3171_vm0, %v3170_v1  ;;  %v283_v5 = vld [vmem:[#allocation2] sm:$0x7] (!%p238_p2)  ;;  %vm282_vm4 = vmand (!%p238_p2), %vm280_vm1, %vm281_vm2  ;;  %vm287_vm5 = vsmask.f32 (!%p238_p2), 256  ;;  %v292_v6 = vld [vmem:[#allocation2 + $0x4] sm:$0x1] (!%p238_p2) }
   0x8   : > { %2944 = vmatpush3.bf16.msra.mxu1 (!%p238_p2), %v3107_v2  ;;  %2937 = vmatprep.subr.bf16.mxu0 (!%p238_p2), %v3170_v1  ;;  %v295_v7 = vld [vmem:[#allocation2 + $0x8] sm:$0x1] (!%p238_p2)  ;;  %v284_v8 = vsel (!%p238_p2), %vm282_vm4, 0, %v283_v5  ;;  %vm3250_vm6 = vmand (!%p238_p2), %vm286_vm3, %vm287_vm5  ;;  %v298_v10 = vld [vmem:[#allocation2 + $0xc] sm:$0x1] (!%p238_p2)  ;;  %vm304_vm7 = vcmask (!%p238_p2), 124928  }
   0x9   : > { %2945 = vmatprep.subr.bf16.mxu1 (!%p238_p2), %v3170_v1  ;;  %2939 = vmatprep.mubr.msk.bf16.mxu0 (!%p238_p2), %vm3171_vm0, %v3170_v1  ;;  %285 = vst [vmem:[#allocation2] sm:$0x7] (!%p238_p2), %v284_v8  ;;  %v293_v11 = vsel (!%p238_p2), %vm3250_vm6, 0, %v292_v6  ;;  %v296_v12 = vsel (!%p238_p2), %vm3250_vm6, 0, %v295_v7  ;;  %v299_v13 = vsel (!%p238_p2), %vm3250_vm6, 0, %v298_v10  ;;  %v3172_v16 = vmov (!%p238_p2), 0  }
   0xa   : > { %v301_v14 = vld [vmem:[#allocation2 + $0x10] sm:$0x1] (!%p238_p2)  ;;  %294 = vst [vmem:[#allocation2 + $0x4] sm:$0x1] (!%p238_p2), %v293_v11  ;;  %297 = vst [vmem:[#allocation2 + $0x8] sm:$0x1] (!%p238_p2), %v296_v12 }
   0xb   : > { %2938 = vmatpush3.bf16.msra.mxu0 (!%p238_p2), %v3108_v3  ;;  %300 = vst [vmem:[#allocation2 + $0xc] sm:$0x1] (!%p238_p2), %v299_v13  ;;  %v302_v15 = vsel (!%p238_p2), %vm3250_vm6, 0, %v301_v14  ;;  %305 = vst.msk [vmem:[#allocation3] sm:$0x7] (!%p238_p2), %vm304_vm7, %v3172_v16  ;;  %vm308_vm8 = vcmask (!%p238_p2), 122880  }
   0xc   : > { %2946 = vmatpush3.bf16.msra.mxu1 (!%p238_p2), %v3109_v4  ;;  %2951 = vmatprep.subr.bf16.mxu0 (!%p238_p2), %v3170_v1  ;;  %307 = vst.msk [vmem:[#allocation3 + $0x14] sm:$0x7] (!%p238_p2), %vm304_vm7, %v3172_v16  ;;  %v313_v17 = vld [vmem:[#allocation3 + $0x4] sm:$0x1] (!%p238_p2)  ;;  %v316_v18 = vld [vmem:[#allocation3 + $0x8] sm:$0x1] (!%p238_p2)  ;;  %vm3277_vm9 = vmand (!%p238_p2), %vm308_vm8, %vm287_vm5 }
   0xd   : > { %s3883_s25 = smov (!%p269_p3, %s2796_s25), 1  ;;  %2959 = vmatprep.subr.bf16.mxu1 %v3170_v1  ;;  %303 = vst [vmem:[#allocation2 + $0x10] sm:$0x1] %v302_v15  ;;  %v319_v20 = vld [vmem:[#allocation3 + $0xc] sm:$0x1]  ;;  %vm328_vm10 = vcmask 124930  }
   0xe   : > { %s2885_s11 = sshll.u32 %s3883_s25, 3  ;;  %s3075_s12 = smul.u32 24, %s3883_s25  ;;  %v322_v21 = vld [vmem:[#allocation3 + $0x10] sm:$0x1]  ;;  %v314_v22 = vsel %vm3277_vm9, 0, %v313_v17  ;;  %v317_v23 = vsel %vm3277_vm9, 0, %v316_v18 }
   0xf   : > { %s3274_s18 = scalar_lea.vmem %s3858_s0, %s2885_s11  ;;  %v320_v24 = vsel %vm3277_vm9, 0, %v319_v20  ;;  %v323_v25 = vsel %vm3277_vm9, 0, %v322_v21  ;;  %v334_v26 = vld [vmem:[#allocation3 + $0x4] sm:$0x4]  ;;  %315 = vst [vmem:[#allocation3 + $0x4] sm:$0x1] %v314_v22 }
  0x10   : > { %s3264_s15 = scalar_lea.vmem %s3865_s7, %s3075_s12  ;;  %318 = vst [vmem:[#allocation3 + $0x8] sm:$0x1] %v317_v23  ;;  %321 = vst [vmem:[#allocation3 + $0xc] sm:$0x1] %v320_v24  ;;  %vm329_vm11 = vsmask.f32 7946 }
  0x11   : > { %324 = vst [vmem:[#allocation3 + $0x10] sm:$0x1] %v323_v25  ;;  %v337_v27 = vld [vmem:[#allocation3 + $0x8] sm:$0x4]  ;;  %v340_v28 = vld [vmem:[#allocation3 + $0xc] sm:$0x4]  ;;  %vm3289_vm12 = vmand %vm328_vm10, %vm329_vm11 }
  0x12   : > { %v343_v30 = vld [vmem:[#allocation3 + $0x10] sm:$0x4]  ;;  %v2804_v31 = vld.sshfl [vmem:[%s3274_s18] sm:$0x3 pattern:$0x76325410] }
  0x13   : > { %v335_v32 = vsel %vm3289_vm12, 0, %v334_v26  ;;  %v338_v33 = vsel %vm3289_vm12, 0, %v337_v27  ;;  %v341_v34 = vsel %vm3289_vm12, 0, %v340_v28  ;;  %v344_v35 = vsel %vm3289_vm12, 0, %v343_v30  ;;  %v289_v36 = vld [vmem:[#allocation2] sm:$0x1] }
  0x14   : > { %336 = vst [vmem:[#allocation3 + $0x4] sm:$0x4] %v335_v32  ;;  %339 = vst [vmem:[#allocation3 + $0x8] sm:$0x4] %v338_v33  ;;  %v290_v38 = vsel %vm3250_vm6, 0, %v289_v36  ;;  %v386_v41 = vshrl.u32 %v2804_v31, 16 }
  0x15   : > { %342 = vst [vmem:[#allocation3 + $0xc] sm:$0x4] %v341_v34  ;;  %345 = vst [vmem:[#allocation3 + $0x10] sm:$0x4] %v344_v35  ;;  %v310_v39 = vld [vmem:[#allocation3] sm:$0x1] }
  0x16   : > { %v2805_v37 = vld.sshfl [vmem:[%s3274_s18 + $0x2] sm:$0x3 pattern:$0x76325410]  ;;  %v325_v40 = vld [vmem:[#allocation3 + $0x14] sm:$0x1] }
  0x17   : > { %291 = vst [vmem:[#allocation2] sm:$0x1] %v290_v38  ;;  %v311_v42 = vsel %vm3277_vm9, 0, %v310_v39  ;;  %v326_v43 = vsel %vm3277_vm9, 0, %v325_v40  ;;  %v331_v44 = vld [vmem:[#allocation3] sm:$0x4] }
  0x18   : > { %v346_v45 = vld [vmem:[#allocation3 + $0x14] sm:$0x4]  ;;  %312 = vst [vmem:[#allocation3] sm:$0x1] %v311_v42  ;;  %327 = vst [vmem:[#allocation3 + $0x14] sm:$0x1] %v326_v43 }
  0x19   : > { %v332_v46 = vsel %vm3289_vm12, 0, %v331_v44  ;;  %v347_v47 = vsel %vm3289_vm12, 0, %v346_v45  ;;  %v2806_v48 = vld.sshfl [vmem:[%s3274_s18 + $0x4] sm:$0x3 pattern:$0x76325410] }
  0x1a   : > { %333 = vst [vmem:[#allocation3] sm:$0x4] %v332_v46  ;;  %348 = vst [vmem:[#allocation3 + $0x14] sm:$0x4] %v347_v47  ;;  %v388_v50 = vrot.slane %v386_v41, 7  ;;  %v389_v51 = vshll.u32 %v2804_v31, 16 }
  0x1b   : > { %v2807_v49 = vld.sshfl [vmem:[%s3274_s18 + $0x6] sm:$0x3 pattern:$0x76325410]  ;;  %v393_v53 = vshrl.u32 %v2805_v37, 16  ;;  %v396_v54 = vshll.u32 %v2805_v37, 16 }
  0x1c   : > { %v400_v55 = vshrl.u32 %v2806_v48, 16  ;;  %v403_v56 = vshll.u32 %v2806_v48, 16  ;;  %v420_v57 = vld [vmem:[#allocation2 + $0x4] sm:$0x7]  ;;  %v391_v58 = vor.u32 %v389_v51, %v388_v50  ;;  %v407_v59 = vshrl.u32 %v2807_v49, 16  ;;  %v3113_v47 = vld [vmem:[%s3859_s1 + $0x30] sm:$0xff]  }
  0x1d   : > { %v410_v60 = vshll.u32 %v2807_v49, 16  ;;  %vm418_vm13 = vsmask.f32 2306  ;;  %v395_v61 = vrot.slane %v393_v53, 7  ;;  %v423_v0 = vld [vmem:[#allocation2 + $0x8] sm:$0x7] }
  0x1e   : > { %v402_v62 = vrot.slane %v400_v55, 7  ;;  %vm3317_vm14 = vmand %vm280_vm1, %vm418_vm13  ;;  %v426_v2 = vld [vmem:[#allocation2 + $0xc] sm:$0x7]  ;;  %v409_v3 = vrot.slane %v407_v59, 7  ;;  %v429_v7 = vld [vmem:[#allocation2 + $0x10] sm:$0x7] }
  0x1f   : > { %v421_v4 = vsel %vm3317_vm14, %v391_v58, %v420_v57  ;;  %v398_v5 = vor.u32 %v396_v54, %v395_v61  ;;  %v3173_v8 = vmov 1983009808   ;;  %v3323_v10 = vshrl.u32 %v448_v52, 7  ;;  %v432_v16 = vld [vmem:[#allocation2] sm:$0x7]  ;;  %s3414_s30 = smov 0  }
  0x20   : > { %v405_v6 = vor.u32 %v403_v56, %v402_v62  ;;  %422 = vst [vmem:[#allocation2 + $0x4] sm:$0x7] %v421_v4  ;;  %v446_v9 = vunpack.c.l.s4 %v3173_v8  ;;  %v412_v11 = vor.u32 %v410_v60, %v409_v3  ;;  %vm477_vm15 = vsmask.f32 1280 }
  0x21   : > { %v424_v12 = vsel %vm3317_vm14, %v398_v5, %v423_v0  ;;  %vm478_vm1 = vsmask.f32 3336  ;;  %vm480_vm2 = vsmask.f32 5392  ;;  %vm482_vm4 = vsmask.f32 7448 }
  0x22   : > { %v427_v13 = vsel %vm3317_vm14, %v405_v6, %v426_v2  ;;  %v447_v14 = vunpack.c.0.s8 %v446_v9  ;;  %425 = vst [vmem:[#allocation2 + $0x8] sm:$0x7] %v424_v12  ;;  %v430_v15 = vsel %vm3317_vm14, %v412_v11, %v429_v7  ;;  %vm479_vm3 = vmor %vm477_vm15, %vm478_vm1  ;;  %vm574_vm6 = vcmask 261120   ;;  %v3115_v2 = vld [vmem:[%s3859_s1 + $0x38] sm:$0xff]  }
  0x23   : > { %428 = vst [vmem:[#allocation2 + $0xc] sm:$0x7] %v427_v13  ;;  %431 = vst [vmem:[#allocation2 + $0x10] sm:$0x7] %v430_v15 }
  0x24   : > { %v3332_v17 = vsub.s32 %v447_v14, %v3323_v10  ;;  %vm481_vm5 = vmor %vm479_vm3, %vm480_vm2 }
  0x25   : > { %vm3354_vm8 = vmor %vm481_vm5, %vm482_vm4 }
  0x26   : > { %v451_v18 = vrot.slane %v432_v16, %v3332_v17 }
  0x27   : > { %v3335_v19 = vld [vmem:[#allocation2 + $0x4] sm:$0x7] }
  0x28   : > { %v459_v20 = vrot.slane %v3335_v19, %v3332_v17  ;;  %v485_v21 = vshrl.u32 %v451_v18, 16  ;;  %v488_v22 = vshll.u32 %v451_v18, 16  ;;  %v619_v23 = vcombine.low %v432_v16, %v3335_v19 }
  0x29   : > { %v452_v24 = vcombine.high %v451_v18, %v451_v18  ;;  %v3340_v25 = vld [vmem:[#allocation2 + $0x8] sm:$0x7] }
  0x2a   : > { %v3342_v26 = vld [vmem:[#allocation2 + $0xc] sm:$0x7]  ;;  %v487_v27 = vrot.slane %v485_v21, 6  ;;  %v490_v28 = vrot.slane %v488_v22, 7  ;;  %v627_v29 = vrot.slane %v619_v23, %v3332_v17  ;;  %v460_v30 = vcombine.high %v459_v20, %v459_v20  ;;  %v436_v49 = vld [vmem:[#allocation2 + $0x10] sm:$0x7] }
  0x2b   : > { %v467_v31 = vrot.slane %v3340_v25, %v3332_v17  ;;  %v475_v32 = vrot.slane %v3342_v26, %v3332_v17  ;;  %v620_v33 = vcombine.low %v3340_v25, %v3342_v26  ;;  %v494_v34 = vshll.u32 %v452_v24, 16 }
  0x2c   : > { %v491_v35 = vor.u32 %v490_v28, %v487_v27  ;;  %v499_v36 = vshrl.u32 %v459_v20, 16  ;;  %v502_v37 = vshll.u32 %v459_v20, 16  ;;  %v508_v38 = vshll.u32 %v460_v30, 16 }
  0x2d   : > { %v634_v39 = vrot.slane %v620_v33, %v3332_v17  ;;  %v468_v40 = vcombine.high %v467_v31, %v467_v31  ;;  %v476_v41 = vcombine.high %v475_v32, %v475_v32  ;;  %v496_v42 = vrot.slane %v494_v34, 7  ;;  %v3112_v33 = vld [vmem:[%s3859_s1 + $0x20] sm:$0xff]  }
  0x2e   : > { %v492_v44 = vrot.slane %v491_v35, 2  ;;  %v501_v45 = vrot.slane %v499_v36, 6  ;;  %v504_v46 = vrot.slane %v502_v37, 7  ;;  %v513_v50 = vshrl.u32 %v467_v31, 16 }
  0x2f   : > { %v635_v48 = vcombine.low %v627_v29, %v634_v39  ;;  %v516_v51 = vshll.u32 %v467_v31, 16  ;;  %v522_v52 = vshll.u32 %v468_v40, 16  ;;  %v510_v54 = vrot.slane %v508_v38, 7 }
  0x30   : > { %v505_v53 = vor.u32 %v504_v46, %v501_v45  ;;  %v527_v55 = vshrl.u32 %v475_v32, 16  ;;  %v530_v56 = vshll.u32 %v475_v32, 16  ;;  %v497_v57 = vsel %vm3354_vm8, %v492_v44, %v496_v42 }
  0x31   : > { %2948 = vmatmul.mubr.msk.bf16.vlgmr.msra.gmra.mrb[0].mxu1 %vm574_vm6, %v635_v48  ;;  %v515_v58 = vrot.slane %v513_v50, 6  ;;  %v518_v59 = vrot.slane %v516_v51, 7  ;;  %v536_v60 = vshll.u32 %v476_v41, 16  ;;  %v779_v0 = vrot.slane %v436_v49, %v3332_v17 }
  0x32   : > { %v506_v61 = vrot.slane %v505_v53, 2  ;;  %v529_v62 = vrot.slane %v527_v55, 6  ;;  %v532_v63 = vrot.slane %v530_v56, 7  ;;  %2960 = vmatpush3.bf16.msra.mxu1 %v3113_v47  ;;  %2963 = vmatprep.mubr.msk.bf16.mxu1 %vm3171_vm0, %v3170_v1  ;;  %v524_v4 = vrot.slane %v522_v52, 7 }
  0x33   : > { %v519_v3 = vor.u32 %v518_v59, %v515_v58  ;;  %v538_v5 = vrot.slane %v536_v60, 7  ;;  %2961 = vmatprep.subr.bf16.mxu1 %v3170_v1  ;;  %v780_v8 = vcombine.high %v779_v0, %v779_v0  ;;  %v782_v9 = vshrl.u32 %v779_v0, 16 }
  0x34   : > { %v511_v6 = vsel %vm3354_vm8, %v506_v61, %v510_v54  ;;  %v533_v7 = vor.u32 %v532_v63, %v529_v62  ;;  %v785_v13 = vshll.u32 %v779_v0, 16  ;;  %v698_v31 = vcombine.low %v3335_v19, %v3340_v25  ;;  %v3114_v19 = vld [vmem:[%s3859_s1 + $0x28] sm:$0xff]   ;;  %v875_v54 = vld [vmem:[%s3860_s2] sm:$0x3] }
  0x35   : > { %v520_v11 = vrot.slane %v519_v3, 2  ;;  %v545_v12 = vcombine.low %v497_v57, %v511_v6  ;;  %v784_v15 = vrot.slane %v782_v9, 6  ;;  %v791_v16 = vshll.u32 %v780_v8, 16 }
  0x36   : > { %v534_v14 = vrot.slane %v533_v7, 2  ;;  %2962 = vmatpush3.bf16.msra.mxu1 %v3115_v2  ;;  %v787_v20 = vrot.slane %v785_v13, 7  ;;  %v699_v32 = vcombine.low %v3342_v26, %v436_v49  ;;  %v706_v38 = vrot.slane %v698_v31, %v3332_v17 }
  0x37   : > { %v525_v18 = vsel %vm3354_vm8, %v520_v11, %v524_v4  ;;  %v553_v23 = vrot.slane %v545_v12, %v3332_v17  ;;  %v793_v27 = vrot.slane %v791_v16, 7  ;;  %v878_v53 = vsub.s32 0, %v3323_v10 }
  0x38   : > { %v539_v21 = vsel %vm3354_vm8, %v534_v14, %v538_v5  ;;  %v788_v24 = vor.u32 %v787_v20, %v784_v15  ;;  %v800_v28 = vcombine.low %v511_v6, %v525_v18  ;;  %v713_v39 = vrot.slane %v699_v32, %v3332_v17 }
  0x39   : > { %v546_v22 = vcombine.low %v525_v18, %v539_v21  ;;  %v886_v56 = vsub.s32 1, %v3323_v10  ;;  %v879_v61 = vrot.slane %v875_v54, %v878_v53 }
  0x3a   : > { %v789_v30 = vrot.slane %v788_v24, 2  ;;  %v808_v37 = vrot.slane %v800_v28, %v3332_v17  ;;  %v714_v40 = vcombine.low %v706_v38, %v713_v39 }
  0x3b   : > { %v560_v29 = vrot.slane %v546_v22, %v3332_v17  ;;  %v887_v2 = vrot.slane %v875_v54, %v886_v56 }
  0x3c   : > { %v794_v35 = vsel %vm3354_vm8, %v789_v30, %v793_v27 }
  0x3d   : > { %v561_v34 = vcombine.low %v553_v23, %v560_v29  ;;  %v801_v36 = vcombine.low %v539_v21, %v794_v35 }
  0x3f   : > { %2940 = vmatmul.mubr.msk.bf16.vlgmr.msra.gmra.mrb[0].mxu0 %vm574_vm6, %v561_v34  ;;  %v815_v25 = vrot.slane %v801_v36, %v3332_v17 }
  0x40   : > { %2952 = vmatpush3.bf16.msra.mxu0 %v3112_v33  ;;  %2955 = vmatprep.mubr.msk.bf16.mxu0 %vm3171_vm0, %v3170_v1 }
  0x41   : > { %2953 = vmatprep.subr.bf16.mxu0 %v3170_v1  ;;  %v816_v26 = vcombine.low %v808_v37, %v815_v25 }
  0x43   : > { %2964 = vmatmul.mubr.msk.bf16.vlgmr.msra.gmra.mrb[4].mxu1 %vm574_vm6, %v816_v26 }
  0x44   : > { %2954 = vmatpush3.bf16.msra.mxu0 %v3114_v19 }
  0x47   : > { %2956 = vmatmul.mubr.msk.bf16.vlgmr.msra.gmra.mrb[4].mxu0 %vm574_vm6, %v714_v40 }
 0x104   : > { %v685_v41 = vpop.f32.mrb[0].mxu1 }
 0x105   : > { %v2949_v42 = vpop.f32.mrb[1].mxu1 }
 0x106   : > { %v688_v44 = vpop.f32.mrb[2].mxu1 }
 0x107   : > { %v2950_v45 = vpop.f32.mrb[3].mxu1 }
 0x112   : > { %v612_v46 = vpop.f32.mrb[0].mxu0 }
 0x113   : > { %v686_v47 = vadd.f32 %v685_v41, %v612_v46  ;;  %v2941_v48 = vpop.f32.mrb[1].mxu0 }
 0x114   : > { %v615_v49 = vpop.f32.mrb[2].mxu0 }
 0x115   : > { %v689_v50 = vadd.f32 %v688_v44, %v615_v49  ;;  %v2942_v51 = vpop.f32.mrb[3].mxu0 }
 0x116   : > { %v866_v52 = vpop.f32.mrb[4].mxu1 }
 0x117   : > { %v2965_v55 = vpop.f32.mrb[5].mxu1 }
 0x118   : > { %v869_v57 = vpop.f32.mrb[6].mxu1 }
 0x119   : > { %v2966_v59 = vpop.f32.mrb[7].mxu1 }
 0x11a   : > { %v764_v58 = vpop.f32.mrb[4].mxu0 }
 0x11b   : > { %v771_v60 = vadd.f32 %v764_v58, %v686_v47  ;;  %v2957_v62 = vpop.f32.mrb[5].mxu0 }
 0x11c   : > { %v767_v63 = vpop.f32.mrb[6].mxu0 }
 0x11d   : > { %v873_v0 = vadd.f32 %v866_v52, %v771_v60  ;;  %v772_v3 = vadd.f32 %v767_v63, %v689_v50  ;;  %v2958_v4 = vpop.f32.mrb[7].mxu0 }
 0x11f   : > { %v880_v5 = vadd.f32 %v879_v61, %v873_v0  ;;  %v874_v6 = vadd.f32 %v869_v57, %v772_v3 }
 0x121   : > { %v888_v7 = vmul.f32 %v887_v2, %v880_v5  ;;  %v881_v8 = vadd.f32 %v879_v61, %v874_v6  ;;  %vm882_vm9 = vcmp.ge.f32.partialorder %v880_v5, 0.0 }
 0x123   : > { %vm883_vm10 = vcmp.ge.f32.partialorder %v881_v8, 0.0  ;;  %v889_v9 = vmul.f32 %v887_v2, %v881_v8  ;;  %v890_v11 = vsel %vm882_vm9, %v880_v5, %v888_v7 }
 0x125   : > { %v891_v12 = vsel %vm883_vm10, %v881_v8, %v889_v9 }
 0x126   : > { %v3409_v13 = vpack.c.bf16 %v891_v12, %v890_v11  }
 0x128   : > { %v3876_v14 = vmov %v3409_v13 }
 0x129 LB: >> { %v3174_v15 = vmov 0.0   ;;  %v3422_v16 = vld [vmem:[#allocation3] sm:$0x7]  ;;  %s2886_s8 = smul.u32 72, %s3168_s30  ;;  %vm3175_vm11 = vmmov 0   ;;  %v922_v18 = vcombine.high %v3164_v14, %v3164_v14  ;;  %v929_v20 = vrot.slane %v3164_v14, %v3332_v17  ;;  %vm3457_vm12 = vmand %vm304_vm7, %vm418_vm13  ;;  %s2857_s12 = sshll.u32 %s3168_s30, 1  ;;  %s3168_s30 = sphi %s3414_s30, %s898_s30   ;;  %v3164_v14 = vphi %v3876_v14, %v3881_v14  }
 0x12a   : >> { %2967 = vmatprep.subr.bf16.mxu0 %v3174_v15  ;;  %2973 = vmatprep.subr.bf16.mxu1 %v3174_v15  ;;  %v3432_v21 = vrot.slane %v3422_v16, %v3332_v17  ;;  %v1002_v35 = vld [vmem:[#allocation3 + $0x4] sm:$0x7]  ;;  %v3453_v26 = vld [vmem:[#allocation3 + $0x14] sm:$0x7]  ;;  %v1005_v44 = vld [vmem:[#allocation3 + $0x8] sm:$0x7]  ;;  %s1784_s16 = scalar_lea.vmem %s3862_s4, %s2857_s12 }
 0x12b   : >> { %2969 = vmatprep.mubr.msk.bf16.mxu0 %vm3175_vm11, %v3174_v15  ;;  %2975 = vmatprep.mubr.msk.bf16.mxu1 %vm3175_vm11, %v3174_v15  ;;  %s3437_s11 = scalar_lea.vmem %s3861_s3, %s2886_s8  ;;  %v936_v22 = vrot.slane %v922_v18, %v3332_v17  ;;  %v937_v23 = vcombine.high %v929_v20, %v929_v20  ;;  %v945_v24 = vrot.slane %v929_v20, %v3332_v17  ;;  %v1008_v52 = vld [vmem:[#allocation3 + $0xc] sm:$0x7]  ;;  %v1011_v59 = vld [vmem:[#allocation3 + $0x10] sm:$0x7]  ;;  %vm1247_vm14 = vcmask 1040384   ;;  %s898_s30 = sadd.s32 1, %s3168_s30  }
 0x12c   : >> { %v3118_v27 = vld [vmem:[%s3437_s11 + $0x8] sm:$0xff]   ;;  %v1057_v28 = vshrl.u32 %v3432_v21, 16  ;;  %v3119_v29 = vld [vmem:[%s3437_s11] sm:$0xff]   ;;  %v3448_v36 = vcombine.high %v3432_v21, %v3432_v21  ;;  %v1060_v37 = vshll.u32 %v3432_v21, 16  ;;  %v3466_v60 = vrot.slane %v3453_v26, %v3332_v17  ;;  %p895_p4 = scmp.ge.s32.totalorder %s898_s30, 8  }
 0x12d   : >> { %v938_v30 = vcombine.high %v936_v22, %v936_v22  ;;  %v952_v31 = vrot.slane %v937_v23, %v3332_v17  ;;  %v959_v32 = vrot.slane %v936_v22, %v3332_v17  ;;  %v968_v33 = vshrl.u32 %v945_v24, 16  ;;  %2968 = vmatpush3.bf16.msra.mxu0 %v3118_v27  ;;  %2974 = vmatpush3.bf16.msra.mxu1 %v3119_v29 }
 0x12e   : >> { %v971_v34 = vshll.u32 %v945_v24, 16  ;;  %2979 = vmatprep.subr.bf16.mxu0 %v3174_v15  ;;  %v1059_v45 = vrot.slane %v1057_v28, 6  ;;  %v1062_v46 = vrot.slane %v1060_v37, 7  ;;  %2985 = vmatprep.subr.bf16.mxu1 %v3174_v15  ;;  %v1066_v0 = vshll.u32 %v3448_v36, 16 }
 0x12f   : >> { %v966_v38 = vrot.slane %v938_v30, %v3332_v17  ;;  %v970_v39 = vrot.slane %v968_v33, 7  ;;  %v975_v19 = vshrl.u32 %v952_v31, 16  ;;  %v978_v25 = vshll.u32 %v952_v31, 16 }
 0x130   : >> { %v982_v40 = vshrl.u32 %v959_v32, 16  ;;  %v985_v41 = vshll.u32 %v959_v32, 16  ;;  %v1063_v63 = vor.u32 %v1062_v46, %v1059_v45  ;;  %v1068_v5 = vrot.slane %v1066_v0, 7 }
 0x131   : >> { %v973_v47 = vor.u32 %v971_v34, %v970_v39  ;;  %v977_v48 = vrot.slane %v975_v19, 7  ;;  %v989_v49 = vshrl.u32 %v966_v38, 16  ;;  %v992_v50 = vshll.u32 %v966_v38, 16 }
 0x132   : >> { %v984_v51 = vrot.slane %v982_v40, 7  ;;  %v1064_v4 = vrot.slane %v1063_v63, 2  ;;  %v1644_v6 = vshrl.u32 %v3466_v60, 16  ;;  %v1647_v7 = vshll.u32 %v3466_v60, 16 }
 0x133   : >> { %v980_v54 = vor.u32 %v978_v25, %v977_v48  ;;  %v991_v55 = vrot.slane %v989_v49, 7  ;;  %v1003_v57 = vsel %vm3457_vm12, %v973_v47, %v1002_v35  ;;  %vm1248_vm15 = vcmask 1042434  }
 0x134   : >> { %v987_v58 = vor.u32 %v985_v41, %v984_v51  ;;  %1004 = vst [vmem:[#allocation3 + $0x4] sm:$0x7] %v1003_v57  ;;  %v1256_v11 = vrot.slane %v3448_v36, 7  ;;  %v3486_v12 = vcombine.high %v3466_v60, %v3466_v60  ;;  %vm1250_vm1 = vcmask 1044484   ;;  %vm1249_vm3 = vmor %vm1247_vm14, %vm1248_vm15 }
 0x135   : >> { %v994_v61 = vor.u32 %v992_v50, %v991_v55  ;;  %v1006_v62 = vsel %vm3457_vm12, %v980_v54, %v1005_v44  ;;  %v1069_v18 = vsel %vm3354_vm8, %v1064_v4, %v1068_v5  ;;  %v3492_v20 = vrot.slane %v1644_v6, 6  ;;  %vm1251_vm5 = vmor %vm1249_vm3, %vm1250_vm1 }
 0x136   : >> { %1007 = vst [vmem:[#allocation3 + $0x8] sm:$0x7] %v1006_v62  ;;  %v1009_v2 = vsel %vm3457_vm12, %v987_v58, %v1008_v52  ;;  %v3494_v22 = vrot.slane %v1647_v7, 7  ;;  %vm1252_vm2 = vcmask 1046534   ;;  %v2837_v33 = vrot.slane %v3432_v21, 9 }
 0x137   : >> { %1010 = vst [vmem:[#allocation3 + $0xc] sm:$0x7] %v1009_v2  ;;  %v1012_v3 = vsel %vm3457_vm12, %v994_v61, %v1011_v59  ;;  %vm1135_vm4 = vcmask 130048   ;;  %vm3536_vm6 = vmor %vm1251_vm5, %vm1252_vm2 }
 0x138   : >> { %1013 = vst [vmem:[#allocation3 + $0x10] sm:$0x7] %v1012_v3  ;;  %v1257_v5 = vsel %vm3536_vm6, %v2837_v33, %v1256_v11 }
 0x13b   : >> { %v3477_v8 = vld [vmem:[#allocation3 + $0x4] sm:$0x7] }
 0x13c   : >> { %v3481_v9 = vrot.slane %v3477_v8, %v3332_v17  ;;  %v1180_v31 = vcombine.low %v3422_v16, %v3477_v8 }
 0x13d   : >> { %v3488_v14 = vld [vmem:[#allocation3 + $0x8] sm:$0x7] }
 0x13e   : >> { %v3496_v23 = vld [vmem:[#allocation3 + $0xc] sm:$0x7]  ;;  %v1039_v24 = vcombine.high %v3481_v9, %v3481_v9  ;;  %v3502_v27 = vrot.slane %v3488_v14, %v3332_v17  ;;  %v1071_v28 = vshrl.u32 %v3481_v9, 16  ;;  %v1074_v29 = vshll.u32 %v3481_v9, 16 }
 0x13f   : >> { %v3510_v30 = vrot.slane %v3496_v23, %v3332_v17  ;;  %v1181_v32 = vcombine.low %v3488_v14, %v3496_v23  ;;  %v3531_v44 = vld [vmem:[#allocation3 + $0x10] sm:$0x7]  ;;  %v1188_v51 = vrot.slane %v1180_v31, %v3332_v17  ;;  %v2838_v54 = vrot.slane %v3481_v9, 9 }
 0x140   : >> { %v3519_v34 = vcombine.high %v3502_v27, %v3502_v27  ;;  %v1073_v35 = vrot.slane %v1071_v28, 6  ;;  %v1076_v36 = vrot.slane %v1074_v29, 7  ;;  %v1080_v37 = vshll.u32 %v1039_v24, 16  ;;  %v3124_v28 = vld [vmem:[%s3437_s11 + $0x18] sm:$0xff]  }
 0x141   : >> { %v3523_v38 = vcombine.high %v3510_v30, %v3510_v30  ;;  %v1085_v39 = vshrl.u32 %v3502_v27, 16  ;;  %v1088_v16 = vshll.u32 %v3502_v27, 16  ;;  %v1099_v19 = vshrl.u32 %v3510_v30, 16 }
 0x142   : >> { %v1077_v21 = vor.u32 %v1076_v36, %v1073_v35  ;;  %v1082_v25 = vrot.slane %v1080_v37, 7  ;;  %v1094_v40 = vshll.u32 %v3519_v34, 16  ;;  %v1102_v41 = vshll.u32 %v3510_v30, 16 }
 0x143   : >> { %v1087_v45 = vrot.slane %v1085_v39, 6  ;;  %v1090_v46 = vrot.slane %v1088_v16, 7  ;;  %v1101_v47 = vrot.slane %v1099_v19, 6  ;;  %v1108_v48 = vshll.u32 %v3523_v38, 16 }
 0x144   : >> { %v1078_v49 = vrot.slane %v1077_v21, 2  ;;  %v1104_v50 = vrot.slane %v1102_v41, 7  ;;  %v1096_v57 = vrot.slane %v1094_v40, 7  ;;  %v1260_v59 = vrot.slane %v1039_v24, 7 }
 0x145   : >> { %v1091_v55 = vor.u32 %v1090_v46, %v1087_v45  ;;  %v1110_v58 = vrot.slane %v1108_v48, 7  ;;  %v1415_v63 = vrot.slane %v3531_v44, %v3332_v17  ;;  %v3548_v0 = vrot.slane %v1181_v32, %v3332_v17  ;;  %v3123_v46 = vld [vmem:[%s3437_s11 + $0x10] sm:$0xff]  }
 0x146   : >> { %v3543_v61 = vsel %vm3354_vm8, %v1078_v49, %v1082_v25  ;;  %v1105_v62 = vor.u32 %v1104_v50, %v1101_v47  ;;  %v1264_v4 = vrot.slane %v3519_v34, 7  ;;  %v1268_v31 = vrot.slane %v3523_v38, 7 }
 0x147   : >> { %v1092_v2 = vrot.slane %v1091_v55, 2  ;;  %v1112_v3 = vcombine.low %v1069_v18, %v3543_v61  ;;  %v1416_v7 = vcombine.high %v1415_v63, %v1415_v63  ;;  %v1418_v9 = vshrl.u32 %v1415_v63, 16 }
 0x148   : >> { %v1106_v6 = vrot.slane %v1105_v62, 2  ;;  %v1421_v24 = vshll.u32 %v1415_v63, 16  ;;  %v1196_v32 = vcombine.low %v1188_v51, %v3548_v0  ;;  %v1261_v18 = vsel %vm3536_vm6, %v2838_v54, %v1260_v59  ;;  %v3128_v59 = vld [vmem:[%s3437_s11 + $0x28] sm:$0xff]  }
 0x149   : >> { %v1097_v29 = vsel %vm3354_vm8, %v1092_v2, %v1096_v57  ;;  %v1420_v35 = vrot.slane %v1418_v9, 6  ;;  %v1427_v33 = vshll.u32 %v1416_v7, 16  ;;  %v1120_v37 = vrot.slane %v1112_v3, %v3332_v17 }
 0x14a   : >> { %v1111_v34 = vsel %vm3354_vm8, %v1106_v6, %v1110_v58  ;;  %v1423_v11 = vrot.slane %v1421_v24, 7  ;;  %v1650_v39 = vor.u32 %v3494_v22, %v3492_v20  ;;  %v1653_v38 = vshll.u32 %v3486_v12, 16  ;;  %2976 = vmatmul.mubr.msk.bf16.vlgmr.msra.gmra.mrb[0].mxu1 %vm1135_vm4, %v1196_v32  ;;  %v3125_v24 = vld [vmem:[%s3437_s11 + $0x20] sm:$0xff]   ;;  %v3130_v32 = vld [vmem:[%s3437_s11 + $0x38] sm:$0xff]  }
 0x14b   : >> { %v1113_v36 = vcombine.low %v1097_v29, %v1111_v34  ;;  %v1502_v19 = vrot.slane %v1416_v7, 7  ;;  %2986 = vmatpush3.bf16.msra.mxu1 %v3124_v28  ;;  %v2839_v21 = vrot.slane %v3502_v27, 9  ;;  %v2840_v25 = vrot.slane %v3510_v30, 9  ;;  %2987 = vmatprep.mubr.msk.bf16.mxu1 %vm3175_vm11, %v3174_v15 }
 0x14c   : >> { %v1424_v16 = vor.u32 %v1423_v11, %v1420_v35  ;;  %v1429_v41 = vrot.slane %v1427_v33, 7  ;;  %v1270_v45 = vcombine.low %v1257_v5, %v1261_v18  ;;  %v1340_v20 = vcombine.low %v3477_v8, %v3488_v14  ;;  %2997 = vmatprep.subr.bf16.mxu1 %v3174_v15  ;;  %v3129_v11 = vld [vmem:[%s3437_s11 + $0x30] sm:$0xff]  }
 0x14d   : >> { %v1127_v40 = vrot.slane %v1113_v36, %v3332_v17  ;;  %v1265_v27 = vsel %vm3536_vm6, %v2839_v21, %v1264_v4  ;;  %v1269_v30 = vsel %vm3536_vm6, %v2840_v25, %v1268_v31  ;;  %v1341_v47 = vcombine.low %v3496_v23, %v3531_v44 }
 0x14e   : >> { %v1425_v22 = vrot.slane %v1424_v16, 2  ;;  %v1655_v49 = vrot.slane %v1653_v38, 7  ;;  %v1271_v50 = vcombine.low %v1265_v27, %v1269_v30  ;;  %v1348_v51 = vrot.slane %v1340_v20, %v3332_v17 }
 0x14f   : >> { %v1128_v48 = vcombine.low %v1120_v37, %v1127_v40  ;;  %v1651_v8 = vrot.slane %v1650_v39, 2  ;;  %v1355_v14 = vrot.slane %v1341_v47, %v3332_v17  ;;  %v2847_v54 = vrot.slane %v1415_v63, 9 }
 0x150   : >> { %v1504_v55 = vcombine.low %v1261_v18, %v1265_v27  ;;  %v1278_v57 = vrot.slane %v1270_v45, %v3332_v17  ;;  %v1285_v58 = vrot.slane %v1271_v50, %v3332_v17  ;;  %v1430_v23 = vsel %vm3354_vm8, %v1425_v22, %v1429_v41 }
 0x151   : >> { %2970 = vmatmul.mubr.msk.bf16.vlgmr.msra.gmra.mrb[0].mxu0 %vm1135_vm4, %v1128_v48  ;;  %v1356_v62 = vcombine.low %v1348_v51, %v1355_v14  ;;  %v1503_v63 = vsel %vm3536_vm6, %v2847_v54, %v1502_v19  ;;  %v1431_v3 = vcombine.low %v3543_v61, %v1097_v29  ;;  %v1656_v4 = vsel %vm3354_vm8, %v1651_v8, %v1655_v49 }
 0x152   : >> { %2980 = vmatpush3.bf16.msra.mxu0 %v3123_v46  ;;  %2981 = vmatprep.mubr.msk.bf16.mxu0 %vm3175_vm11, %v3174_v15  ;;  %v1505_v2 = vcombine.low %v1269_v30, %v1503_v63  ;;  %v1512_v5 = vrot.slane %v1504_v55, %v3332_v17  ;;  %v1432_v6 = vcombine.low %v1111_v34, %v1430_v23  ;;  %v2854_v33 = vrot.slane %v3466_v60, 9 }
 0x153   : >> { %2991 = vmatprep.subr.bf16.mxu0 %v3174_v15  ;;  %2988 = vmatmul.mubr.msk.bf16.vlgmr.msra.gmra.mrb[4].mxu1 %vm1135_vm4, %v1356_v62  ;;  %v1286_v7 = vcombine.low %v1278_v57, %v1285_v58  ;;  %v1657_v61 = vcombine.low %v1430_v23, %v1656_v4  ;;  %v1439_v29 = vrot.slane %v1431_v3, %v3332_v17  ;;  %v1720_v36 = vrot.slane %v3486_v12, 7  ;;  %v3131_v12 = vld [vmem:[%s3437_s11 + $0x40] sm:$0xff]  }
 0x154   : >> { %2998 = vmatpush3.bf16.msra.mxu1 %v3128_v59  ;;  %2999 = vmatprep.mubr.msk.bf16.mxu1 %vm3175_vm11, %v3174_v15  ;;  %v1519_v9 = vrot.slane %v1505_v2, %v3332_v17  ;;  %v1446_v31 = vrot.slane %v1432_v6, %v3332_v17  ;;  %v1574_v34 = vcombine.low %v3531_v44, %v3453_v26 }
 0x155   : >> { %3009 = vmatprep.subr.bf16.mxu1 %v3174_v15  ;;  %v1664_v18 = vrot.slane %v1657_v61, %v3332_v17  ;;  %v1721_v26 = vsel %vm3536_vm6, %v2854_v33, %v1720_v36  ;;  %v1785_v33 = vld [vmem:[%s1784_s16] sm:$0x3] }
 0x156   : >> { %v1520_v28 = vcombine.low %v1512_v5, %v1519_v9  ;;  %v1447_v35 = vcombine.low %v1439_v29, %v1446_v31  ;;  %v1581_v39 = vrot.slane %v1574_v34, %v3332_v17  ;;  %v1722_v44 = vcombine.low %v1503_v63, %v1721_v26 }
 0x157   : >> { %v1665_v37 = vcombine.low %v1127_v40, %v1664_v18 }
 0x158   : >> { %v1582_v60 = vcombine.low %v3548_v0, %v1581_v39  ;;  %v1729_v38 = vrot.slane %v1722_v44, %v3332_v17 }
 0x159   : >> { %2982 = vmatmul.mubr.msk.bf16.vlgmr.msra.gmra.mrb[4].mxu0 %vm1135_vm4, %v1286_v7 }
 0x15a   : >> { %2992 = vmatpush3.bf16.msra.mxu0 %v3125_v24  ;;  %2993 = vmatprep.mubr.msk.bf16.mxu0 %vm3175_vm11, %v3174_v15  ;;  %v1730_v16 = vcombine.low %v1285_v58, %v1729_v38 }
 0x15b   : >> { %3003 = vmatprep.subr.bf16.mxu0 %v3174_v15  ;;  %3000 = vmatmul.mubr.msk.bf16.vlgmr.msra.gmra.mrb[8].mxu1 %vm1135_vm4, %v1520_v28 }
 0x15c   : >> { %3010 = vmatpush3.bf16.msra.mxu1 %v3130_v32  ;;  %3011 = vmatprep.mubr.msk.bf16.mxu1 %vm3175_vm11, %v3174_v15 }
 0x15d   : > { %3027 = vmatprep.subr.bf16.mxu1 (%p895_p4), %v3170_v1 }
 0x161   : >> { %2994 = vmatmul.mubr.msk.bf16.vlgmr.msra.gmra.mrb[8].mxu0 %vm1135_vm4, %v1447_v35 }
 0x162   : >> { %3004 = vmatpush3.bf16.msra.mxu0 %v3129_v11  ;;  %3005 = vmatprep.mubr.msk.bf16.mxu0 %vm3175_vm11, %v3174_v15 }
 0x163   : >> { %3015 = vmatprep.subr.bf16.mxu0 %v3174_v15  ;;  %3012 = vmatmul.mubr.msk.bf16.vlgmr.msra.gmra.mrb[12].mxu1 %vm1135_vm4, %v1665_v37  ;;  %v1789_v37 = vrot.slane %v1785_v33, %v878_v53 }
 0x164   : > { %3029 = vmatprep.mubr.msk.bf16.mxu1 (%p895_p4), %vm3171_vm0, %v3170_v1 }
 0x169   : >> { %3006 = vmatmul.mubr.msk.bf16.vlgmr.msra.gmra.mrb[12].mxu0 %vm1135_vm4, %v1582_v60  ;;  %v1797_v60 = vrot.slane %v1785_v33, %v886_v56  ;;  %v3665_v56 = vld [vmem:[#allocation3] sm:$0x7] (%p895_p4) }
 0x16a   : >> { %3016 = vmatpush3.bf16.msra.mxu0 %v3131_v12  ;;  %3017 = vmatprep.mubr.msk.bf16.mxu0 %vm3175_vm11, %v3174_v15 }
 0x16b   : > { %3021 = vmatprep.subr.bf16.mxu0 (%p895_p4), %v3170_v1 }
 0x171   : >> { %3018 = vmatmul.mubr.msk.bf16.vlgmr.msra.gmra.mrb[16].mxu0 %vm1135_vm4, %v1730_v16 }
 0x172   : > { %3023 = vmatprep.mubr.msk.bf16.mxu0 (%p895_p4), %vm3171_vm0, %v3170_v1 }
 0x21d   : >> { %v1240_v19 = vpop.f32.mrb[0].mxu1 }
 0x21e   : >> { %v2977_v21 = vpop.f32.mrb[1].mxu1 }
 0x21f   : >> { %v1243_v25 = vpop.f32.mrb[2].mxu1 }
 0x220   : >> { %v2978_v40 = vpop.f32.mrb[3].mxu1 }
 0x224   : >> { %v1173_v41 = vpop.f32.mrb[0].mxu0 }
 0x225   : >> { %v1241_v45 = vadd.f32 %v1240_v19, %v1173_v41  ;;  %v2971_v0 = vpop.f32.mrb[1].mxu0 }
 0x226   : >> { %v1176_v20 = vpop.f32.mrb[2].mxu0  ;;  %v1400_v27 = vpop.f32.mrb[4].mxu1 }
 0x227   : >> { %v1244_v22 = vadd.f32 %v1243_v25, %v1176_v20  ;;  %v2972_v46 = vpop.f32.mrb[3].mxu0  ;;  %v2989_v30 = vpop.f32.mrb[5].mxu1  ;;  %v3132_v20 = vld [vmem:[%s3863_s5 + $0x8] sm:$0xff] (%p895_p4)  }
 0x228   : >> { %v1403_v47 = vpop.f32.mrb[6].mxu1  ;;  %v3133_v46 = vld [vmem:[%s3863_s5] sm:$0xff] (%p895_p4)   ;;  %3022 = vmatpush3.bf16.msra.mxu0 (%p895_p4), %v3132_v20 }
 0x229   : >> { %v2990_v48 = vpop.f32.mrb[7].mxu1  ;;  %3028 = vmatpush3.bf16.msra.mxu1 (%p895_p4), %v3133_v46  ;;  %3033 = vmatprep.subr.bf16.mxu0 (%p895_p4), %v3170_v1 }
 0x22a   : > { %3039 = vmatprep.subr.bf16.mxu1 (%p895_p4), %v3170_v1 }
 0x22c   : >> { %v1330_v49 = vpop.f32.mrb[4].mxu0 }
 0x22d   : >> { %v1337_v50 = vadd.f32 %v1330_v49, %v1241_v45  ;;  %v2983_v15 = vpop.f32.mrb[5].mxu0 }
 0x22e   : >> { %v1333_v51 = vpop.f32.mrb[6].mxu0  ;;  %v1564_v55 = vpop.f32.mrb[8].mxu1 }
 0x22f   : >> { %v1338_v8 = vadd.f32 %v1333_v51, %v1244_v22  ;;  %v1407_v14 = vadd.f32 %v1400_v27, %v1337_v50  ;;  %v2984_v54 = vpop.f32.mrb[7].mxu0  ;;  %v3001_v57 = vpop.f32.mrb[9].mxu1 }
 0x230   : >> { %v1567_v59 = vpop.f32.mrb[10].mxu1 }
 0x231   : >> { %v1408_v58 = vadd.f32 %v1403_v47, %v1338_v8  ;;  %v3002_v23 = vpop.f32.mrb[11].mxu1  ;;  %v1931_v47 = vrot.slane (%p895_p4), %v3665_v56, %v3332_v17  ;;  %v1903_v8 = vld [vmem:[#allocation3 + $0x4] sm:$0x7] (%p895_p4) }
 0x233   : > { %v1958_v54 = vshrl.u32 (%p895_p4), %v1931_v47, 16 }
 0x234   : >> { %v1491_v62 = vpop.f32.mrb[8].mxu0 }
 0x235   : >> { %v1498_v63 = vadd.f32 %v1491_v62, %v1407_v14  ;;  %v2995_v2 = vpop.f32.mrb[9].mxu0 }
 0x236   : >> { %v1494_v3 = vpop.f32.mrb[10].mxu0  ;;  %v1709_v7 = vpop.f32.mrb[12].mxu1  ;;  %v1906_v2 = vld [vmem:[#allocation3 + $0x8] sm:$0x7] (%p895_p4) }
 0x237   : >> { %v1499_v4 = vadd.f32 %v1494_v3, %v1408_v58  ;;  %v1571_v5 = vadd.f32 %v1564_v55, %v1498_v63  ;;  %v2996_v6 = vpop.f32.mrb[11].mxu0  ;;  %v3013_v9 = vpop.f32.mrb[13].mxu1  ;;  %v1961_v55 = vshll.u32 (%p895_p4), %v1931_v47, 16  ;;  %v1960_v3 = vrot.slane (%p895_p4), %v1958_v54, 6 }
 0x238   : >> { %v1712_v61 = vpop.f32.mrb[14].mxu1 }
 0x239   : >> { %v1572_v24 = vadd.f32 %v1567_v59, %v1499_v4  ;;  %v3014_v28 = vpop.f32.mrb[15].mxu1  ;;  %v1963_v4 = vrot.slane (%p895_p4), %v1961_v55, 7 }
 0x23c   : >> { %v1626_v29 = vpop.f32.mrb[12].mxu0 }
 0x23d   : >> { %v1633_v31 = vadd.f32 %v1626_v29, %v1571_v5  ;;  %v3007_v32 = vpop.f32.mrb[13].mxu0 }
 0x23e   : >> { %v1629_v18 = vpop.f32.mrb[14].mxu0  ;;  %v3677_v32 = vld [vmem:[#allocation3 + $0x14] sm:$0x7] (%p895_p4) }
 0x23f   : >> { %v1634_v34 = vadd.f32 %v1629_v18, %v1572_v24  ;;  %v1716_v35 = vadd.f32 %v1709_v7, %v1633_v31  ;;  %v3008_v11 = vpop.f32.mrb[15].mxu0 }
 0x241   : >> { %v1717_v36 = vadd.f32 %v1712_v61, %v1634_v34  ;;  %v1909_v61 = vld [vmem:[#allocation3 + $0xc] sm:$0x7] (%p895_p4)  ;;  %v1912_v34 = vld [vmem:[#allocation3 + $0x10] sm:$0x7] (%p895_p4) }
 0x244   : >> { %v1774_v39 = vpop.f32.mrb[16].mxu0 }
 0x245   : >> { %v1781_v26 = vadd.f32 %v1774_v39, %v1716_v35  ;;  %v3019_v44 = vpop.f32.mrb[17].mxu0  ;;  %v1964_v35 = vor.u32 (%p895_p4), %v1963_v4, %v1960_v3 }
 0x246   : >> { %v1777_v12 = vpop.f32.mrb[18].mxu0 }
 0x247   : >> { %v1790_v38 = vadd.f32 %v1789_v37, %v1781_v26  ;;  %v1782_v16 = vadd.f32 %v1777_v12, %v1717_v36  ;;  %v3020_v19 = vpop.f32.mrb[19].mxu0  ;;  %v1965_v12 = vrot.slane (%p895_p4), %v1964_v35, 2  ;;  %v3137_v35 = vld [vmem:[%s3863_s5 + $0x18] sm:$0xff] (%p895_p4)  }
 0x249   : >> { %v1798_v21 = vmul.f32 %v1797_v60, %v1790_v38  ;;  %v1791_v25 = vadd.f32 %v1789_v37, %v1782_v16  ;;  %vm1792_vm9 = vcmp.ge.f32.partialorder %v1790_v38, 0.0  ;;  %v3683_v37 = vrot.slane (%p895_p4), %v3677_v32, %v3332_v17 }
 0x24a   : > { %897 = sbr.rel (!%p895_p4) target bundleno = 297 (0x129), region = 94 }
 0x24b   : >> { %vm1793_vm10 = vcmp.ge.f32.partialorder %v1791_v25, 0.0  ;;  %v1799_v40 = vmul.f32 %v1797_v60, %v1791_v25  ;;  %v1800_v41 = vsel %vm1792_vm9, %v1790_v38, %v1798_v21  ;;  %v2862_v60 = vrot.slane (%p895_p4), %v1931_v47, 9 }
 0x24c   : > { %v2545_v16 = vshrl.u32 (%p895_p4), %v3683_v37, 16  ;;  %v2548_v20 = vshll.u32 (%p895_p4), %v3683_v37, 16 }
 0x24d   : >> { %v1801_v45 = vsel %vm1793_vm10, %v1791_v25, %v1799_v40 }
 0x24e   : >> { %v1802_v0 = vpack.c.bf16 %v1801_v45, %v1800_v41   ;;  %v3708_v45 = vcombine.high (%p895_p4), %v3683_v37, %v3683_v37 }
 0x250   : >> { %v3881_v14 = vmov %v1802_v0  ;;  %v1803_v22 = vadd.bf16 (%p895_p4), %v1802_v0, %v3409_v13  ;;  %v3710_v0 = vrot.slane (%p895_p4), %v2545_v16, 6 }
 0x251   : > { %v1932_v14 = vcombine.high %v1931_v47, %v1931_v47 }
 0x252   : > { %v1823_v10 = vcombine.high %v1803_v22, %v1803_v22  ;;  %v1830_v53 = vrot.slane %v1803_v22, %v3332_v17 }
 0x253   : > { %v1967_v36 = vshll.u32 %v1932_v14, 16  ;;  %v2157_v44 = vrot.slane %v1932_v14, 7 }
 0x254   : > { %v1837_v13 = vrot.slane %v1823_v10, %v3332_v17  ;;  %v1838_v27 = vcombine.high %v1830_v53, %v1830_v53  ;;  %v1846_v30 = vrot.slane %v1830_v53, %v3332_v17 }
 0x255   : > { %v1969_v38 = vrot.slane %v1967_v36, 7  ;;  %v3700_v42 = vsel %vm3536_vm6, %v2862_v60, %v2157_v44 }
 0x256   : > { %v1839_v48 = vcombine.high %v1837_v13, %v1837_v13  ;;  %v1853_v49 = vrot.slane %v1838_v27, %v3332_v17  ;;  %v1860_v50 = vrot.slane %v1837_v13, %v3332_v17  ;;  %v1869_v15 = vshrl.u32 %v1846_v30, 16 }
 0x257   : > { %v1872_v51 = vshll.u32 %v1846_v30, 16  ;;  %v1970_v41 = vsel %vm3354_vm8, %v1965_v12, %v1969_v38  ;;  %v2550_v12 = vrot.slane %v2548_v20, 7 }
 0x258   : > { %v1867_v57 = vrot.slane %v1839_v48, %v3332_v17  ;;  %v1871_v58 = vrot.slane %v1869_v15, 7  ;;  %v1876_v59 = vshrl.u32 %v1853_v49, 16  ;;  %v1879_v23 = vshll.u32 %v1853_v49, 16 }
 0x259   : > { %v1883_v62 = vshrl.u32 %v1860_v50, 16  ;;  %v1886_v63 = vshll.u32 %v1860_v50, 16 }
 0x25a   : > { %v1874_v5 = vor.u32 %v1872_v51, %v1871_v58  ;;  %v1878_v6 = vrot.slane %v1876_v59, 7  ;;  %v1890_v7 = vshrl.u32 %v1867_v57, 16  ;;  %v1893_v9 = vshll.u32 %v1867_v57, 16 }
 0x25b   : > { %v1885_v24 = vrot.slane %v1883_v62, 7 }
 0x25c   : > { %v1881_v28 = vor.u32 %v1879_v23, %v1878_v6  ;;  %v1892_v29 = vrot.slane %v1890_v7, 7  ;;  %v1904_v31 = vsel %vm3457_vm12, %v1874_v5, %v1903_v8 }
 0x25d   : > { %v1888_v18 = vor.u32 %v1886_v63, %v1885_v24  ;;  %1905 = vst [vmem:[#allocation3 + $0x4] sm:$0x7] %v1904_v31 }
 0x25e   : > { %v1895_v11 = vor.u32 %v1893_v9, %v1892_v29  ;;  %v1907_v33 = vsel %vm3457_vm12, %v1881_v28, %v1906_v2 }
 0x25f   : > { %1908 = vst [vmem:[#allocation3 + $0x8] sm:$0x7] %v1907_v33  ;;  %v1910_v39 = vsel %vm3457_vm12, %v1888_v18, %v1909_v61 }
 0x260   : > { %1911 = vst [vmem:[#allocation3 + $0xc] sm:$0x7] %v1910_v39  ;;  %v1913_v26 = vsel %vm3457_vm12, %v1895_v11, %v1912_v34 }
 0x261   : > { %1914 = vst [vmem:[#allocation3 + $0x10] sm:$0x7] %v1913_v26 }
 0x264   : > { %v3690_v19 = vld [vmem:[#allocation3 + $0x4] sm:$0x7] }
 0x265   : > { %v3694_v21 = vrot.slane %v3690_v19, %v3332_v17  ;;  %v2081_v25 = vcombine.low %v3665_v56, %v3690_v19 }
 0x266   : > { %v3702_v40 = vld [vmem:[#allocation3 + $0x8] sm:$0x7] }
 0x267   : > { %v3713_v22 = vld [vmem:[#allocation3 + $0xc] sm:$0x7]  ;;  %v1940_v46 = vcombine.high %v3694_v21, %v3694_v21  ;;  %v3719_v10 = vrot.slane %v3702_v40, %v3332_v17  ;;  %v1972_v53 = vshrl.u32 %v3694_v21, 16  ;;  %v1975_v56 = vshll.u32 %v3694_v21, 16 }
 0x268   : > { %v3725_v13 = vrot.slane %v3713_v22, %v3332_v17  ;;  %v2082_v27 = vcombine.low %v3702_v40, %v3713_v22  ;;  %v2089_v30 = vrot.slane %v2081_v25, %v3332_v17  ;;  %v2863_v47 = vrot.slane %v3694_v21, 9  ;;  %v3733_v51 = vld [vmem:[#allocation3 + $0x10] sm:$0x7] }
 0x269   : > { %v1948_v48 = vcombine.high %v3719_v10, %v3719_v10  ;;  %v1974_v49 = vrot.slane %v1972_v53, 6  ;;  %v1977_v50 = vrot.slane %v1975_v56, 7  ;;  %v1981_v15 = vshll.u32 %v1940_v46, 16 }
 0x26a   : > { %v1956_v8 = vcombine.high %v3725_v13, %v3725_v13  ;;  %v1986_v14 = vshrl.u32 %v3719_v10, 16  ;;  %v1989_v54 = vshll.u32 %v3719_v10, 16  ;;  %v2000_v55 = vshrl.u32 %v3725_v13, 16 }
 0x26b   : > { %v1978_v57 = vor.u32 %v1977_v50, %v1974_v49  ;;  %v1983_v58 = vrot.slane %v1981_v15, 7  ;;  %v1995_v59 = vshll.u32 %v1948_v48, 16  ;;  %v2003_v23 = vshll.u32 %v3725_v13, 16 }
 0x26c   : > { %v1988_v62 = vrot.slane %v1986_v14, 6  ;;  %v1991_v63 = vrot.slane %v1989_v54, 7  ;;  %v2002_v2 = vrot.slane %v2000_v55, 6  ;;  %v2009_v3 = vshll.u32 %v1956_v8, 16  ;;  %v3136_v55 = vld [vmem:[%s3863_s5 + $0x10] sm:$0xff]  }
 0x26d   : > { %v1979_v4 = vrot.slane %v1978_v57, 2  ;;  %v1997_v5 = vrot.slane %v1995_v59, 7  ;;  %v2005_v6 = vrot.slane %v2003_v23, 7  ;;  %v2316_v7 = vrot.slane %v3733_v51, %v3332_v17 }
 0x26e   : > { %v1992_v9 = vor.u32 %v1991_v63, %v1988_v62  ;;  %v2011_v24 = vrot.slane %v2009_v3, 7  ;;  %v3744_v61 = vrot.slane %v2082_v27, %v3332_v17  ;;  %v2161_v28 = vrot.slane %v1940_v46, 7 }
 0x26f   : > { %v3748_v29 = vsel %vm3354_vm8, %v1979_v4, %v1983_v58  ;;  %v2006_v31 = vor.u32 %v2005_v6, %v2002_v2  ;;  %v2317_v18 = vcombine.high %v2316_v7, %v2316_v7  ;;  %v2319_v34 = vshrl.u32 %v2316_v7, 16 }
 0x270   : > { %v1993_v11 = vrot.slane %v1992_v9, 2  ;;  %v2013_v33 = vcombine.low %v1970_v41, %v3748_v29  ;;  %v2322_v36 = vshll.u32 %v2316_v7, 16  ;;  %v2097_v39 = vcombine.low %v2089_v30, %v3744_v61 }
 0x271   : > { %v2007_v26 = vrot.slane %v2006_v31, 2  ;;  %v2321_v60 = vrot.slane %v2319_v34, 6  ;;  %v2328_v44 = vshll.u32 %v2317_v18, 16  ;;  %v2864_v21 = vrot.slane %v3719_v10, 9  ;;  %v3138_v34 = vld [vmem:[%s3863_s5 + $0x20] sm:$0xff]  }
 0x272   : > { %v1998_v38 = vsel %vm3354_vm8, %v1993_v11, %v1997_v5  ;;  %v2324_v16 = vrot.slane %v2322_v36, 7  ;;  %3030 = vmatmul.mubr.msk.bf16.vlgmr.msra.gmra.mrb[0].mxu1 %vm1135_vm4, %v2097_v39  ;;  %v2554_v25 = vshll.u32 %v3708_v45, 16  ;;  %v2021_v46 = vrot.slane %v2013_v33, %v3332_v17  ;;  %v3143_v33 = vld [vmem:[%s3863_s5 + $0x38] sm:$0xff]  }
 0x273   : > { %v2012_v41 = vsel %vm3354_vm8, %v2007_v26, %v2011_v24  ;;  %3040 = vmatpush3.bf16.msra.mxu1 %v3137_v35  ;;  %v2162_v53 = vsel %vm3536_vm6, %v2863_v47, %v2161_v28  ;;  %v2165_v20 = vrot.slane %v1948_v48, 7  ;;  %3041 = vmatprep.mubr.msk.bf16.mxu1 %vm3171_vm0, %v3170_v1  ;;  %v2865_v30 = vrot.slane %v3725_v13, 9 }
 0x274   : > { %v2014_v56 = vcombine.low %v1998_v38, %v2012_v41  ;;  %v2325_v27 = vor.u32 %v2324_v16, %v2321_v60  ;;  %v2169_v10 = vrot.slane %v1956_v8, 7  ;;  %3051 = vmatprep.subr.bf16.mxu1 %v3170_v1  ;;  %v2330_v49 = vrot.slane %v2328_v44, 7  ;;  %v3142_v60 = vld [vmem:[%s3863_s5 + $0x30] sm:$0xff]  }
 0x275   : > { %v2166_v50 = vsel %vm3536_vm6, %v2864_v21, %v2165_v20  ;;  %v2241_v15 = vcombine.low %v3690_v19, %v3702_v40  ;;  %v2551_v47 = vor.u32 %v2550_v12, %v3710_v0  ;;  %v2171_v54 = vcombine.low %v3700_v42, %v2162_v53  ;;  %v3141_v42 = vld [vmem:[%s3863_s5 + $0x28] sm:$0xff]  }
 0x276   : > { %v2028_v48 = vrot.slane %v2014_v56, %v3332_v17  ;;  %v2170_v14 = vsel %vm3536_vm6, %v2865_v30, %v2169_v10  ;;  %v2242_v13 = vcombine.low %v3713_v22, %v3733_v51  ;;  %v2326_v8 = vrot.slane %v2325_v27, 2 }
 0x277   : > { %v2172_v57 = vcombine.low %v2166_v50, %v2170_v14  ;;  %v2249_v19 = vrot.slane %v2241_v15, %v3332_v17  ;;  %v2872_v40 = vrot.slane %v2316_v7, 9  ;;  %v2403_v59 = vrot.slane %v2317_v18, 7 }
 0x278   : > { %v2029_v0 = vcombine.low %v2021_v46, %v2028_v48  ;;  %v2256_v58 = vrot.slane %v2242_v13, %v3332_v17  ;;  %v2405_v23 = vcombine.low %v2162_v53, %v2166_v50  ;;  %v2552_v62 = vrot.slane %v2551_v47, 2 }
 0x279   : > { %v2556_v22 = vrot.slane %v2554_v25, 7  ;;  %v2179_v63 = vrot.slane %v2171_v54, %v3332_v17  ;;  %v2186_v2 = vrot.slane %v2172_v57, %v3332_v17  ;;  %v2404_v4 = vsel %vm3536_vm6, %v2872_v40, %v2403_v59 }
 0x27a   : > { %3024 = vmatmul.mubr.msk.bf16.vlgmr.msra.gmra.mrb[0].mxu0 %vm1135_vm4, %v2029_v0  ;;  %v2257_v3 = vcombine.low %v2249_v19, %v2256_v58  ;;  %v2331_v5 = vsel %vm3354_vm8, %v2326_v8, %v2330_v49  ;;  %v2406_v6 = vcombine.low %v2170_v14, %v2404_v4  ;;  %v2413_v7 = vrot.slane %v2405_v23, %v3332_v17 }
 0x27b   : > { %3034 = vmatpush3.bf16.msra.mxu0 %v3136_v55  ;;  %3035 = vmatprep.mubr.msk.bf16.mxu0 %vm3171_vm0, %v3170_v1  ;;  %v2557_v24 = vsel %vm3354_vm8, %v2552_v62, %v2556_v22  ;;  %v2332_v28 = vcombine.low %v3748_v29, %v1998_v38  ;;  %v2333_v31 = vcombine.low %v2012_v41, %v2331_v5  ;;  %v2879_v44 = vrot.slane %v3683_v37, 9 }
 0x27c   : > { %3045 = vmatprep.subr.bf16.mxu0 %v3170_v1  ;;  %3042 = vmatmul.mubr.msk.bf16.vlgmr.msra.gmra.mrb[4].mxu1 %vm1135_vm4, %v2257_v3  ;;  %v2420_v9 = vrot.slane %v2406_v6, %v3332_v17  ;;  %v2187_v18 = vcombine.low %v2179_v63, %v2186_v2  ;;  %v2558_v11 = vcombine.low %v2331_v5, %v2557_v24  ;;  %v2621_v12 = vrot.slane %v3708_v45, 7  ;;  %v3145_v45 = vld [vmem:[%s3863_s5 + $0x40] sm:$0xff]  }
 0x27d   : > { %3052 = vmatpush3.bf16.msra.mxu1 %v3141_v42  ;;  %3053 = vmatprep.mubr.msk.bf16.mxu1 %vm3171_vm0, %v3170_v1  ;;  %v2340_v36 = vrot.slane %v2332_v28, %v3332_v17  ;;  %v2347_v43 = vrot.slane %v2333_v31, %v3332_v17  ;;  %v2475_v26 = vcombine.low %v3733_v51, %v3677_v32 }
 0x27e   : > { %3063 = vmatprep.subr.bf16.mxu1 %v3170_v1  ;;  %v2421_v35 = vcombine.low %v2413_v7, %v2420_v9  ;;  %v2565_v29 = vrot.slane %v2558_v11, %v3332_v17  ;;  %v2622_v32 = vsel %vm3536_vm6, %v2879_v44, %v2621_v12 }
 0x27f   : > { %v2348_v39 = vcombine.low %v2340_v36, %v2347_v43  ;;  %v2482_v16 = vrot.slane %v2475_v26, %v3332_v17  ;;  %v2623_v51 = vcombine.low %v2404_v4, %v2622_v32 }
 0x280   : > { %v2566_v38 = vcombine.low %v2028_v48, %v2565_v29 }
 0x281   : > { %v2483_v37 = vcombine.low %v3744_v61, %v2482_v16  ;;  %v2630_v21 = vrot.slane %v2623_v51, %v3332_v17 }
 0x282   : > { %3036 = vmatmul.mubr.msk.bf16.vlgmr.msra.gmra.mrb[4].mxu0 %vm1135_vm4, %v2187_v18 }
 0x283   : > { %3046 = vmatpush3.bf16.msra.mxu0 %v3138_v34  ;;  %3047 = vmatprep.mubr.msk.bf16.mxu0 %vm3171_vm0, %v3170_v1  ;;  %v2631_v52 = vcombine.low %v2186_v2, %v2630_v21 }
 0x284   : > { %3057 = vmatprep.subr.bf16.mxu0 %v3170_v1  ;;  %3054 = vmatmul.mubr.msk.bf16.vlgmr.msra.gmra.mrb[8].mxu1 %vm1135_vm4, %v2421_v35 }
 0x285   : > { %3064 = vmatpush3.bf16.msra.mxu1 %v3143_v33  ;;  %3065 = vmatprep.mubr.msk.bf16.mxu1 %vm3171_vm0, %v3170_v1  ;;  %v2882_v33 = vld [vmem:[%s3864_s6] ss:$0 sm:$0xff] }
 0x28a   : > { %3048 = vmatmul.mubr.msk.bf16.vlgmr.msra.gmra.mrb[8].mxu0 %vm1135_vm4, %v2348_v39 }
 0x28b   : > { %3058 = vmatpush3.bf16.msra.mxu0 %v3142_v60  ;;  %3059 = vmatprep.mubr.msk.bf16.mxu0 %vm3171_vm0, %v3170_v1 }
 0x28c   : > { %3069 = vmatprep.subr.bf16.mxu0 %v3170_v1  ;;  %3066 = vmatmul.mubr.msk.bf16.vlgmr.msra.gmra.mrb[12].mxu1 %vm1135_vm4, %v2566_v38 }
 0x292   : > { %3060 = vmatmul.mubr.msk.bf16.vlgmr.msra.gmra.mrb[12].mxu0 %vm1135_vm4, %v2483_v37 }
 0x293   : > { %3070 = vmatpush3.bf16.msra.mxu0 %v3145_v45  ;;  %3071 = vmatprep.mubr.msk.bf16.mxu0 %vm3171_vm0, %v3170_v1  ;;  %vm2727_vm0 = vcmask 125952  }
 0x29a   : > { %3072 = vmatmul.mubr.msk.bf16.vlgmr.msra.gmra.mrb[16].mxu0 %vm1135_vm4, %v2631_v52 }
 0x345   : > { %v2141_v25 = vpop.f32.mrb[0].mxu1 }
 0x346   : > { %v3031_v41 = vpop.f32.mrb[1].mxu1 }
 0x347   : > { %v2144_v46 = vpop.f32.mrb[2].mxu1 }
 0x348   : > { %v3032_v61 = vpop.f32.mrb[3].mxu1 }
 0x34d   : > { %v2074_v53 = vpop.f32.mrb[0].mxu0 }
 0x34e   : > { %v2142_v20 = vadd.f32 %v2141_v25, %v2074_v53  ;;  %v3025_v56 = vpop.f32.mrb[1].mxu0 }
 0x34f   : > { %v2077_v27 = vpop.f32.mrb[2].mxu0  ;;  %v2301_v30 = vpop.f32.mrb[4].mxu1 }
 0x350   : > { %v2145_v10 = vadd.f32 %v2144_v46, %v2077_v27  ;;  %v3026_v49 = vpop.f32.mrb[3].mxu0  ;;  %v3043_v50 = vpop.f32.mrb[5].mxu1 }
 0x351   : > { %v2304_v17 = vpop.f32.mrb[6].mxu1 }
 0x352   : > { %v3044_v15 = vpop.f32.mrb[7].mxu1 }
 0x355   : > { %v2231_v47 = vpop.f32.mrb[4].mxu0 }
 0x356   : > { %v2238_v48 = vadd.f32 %v2231_v47, %v2142_v20  ;;  %v3037_v1 = vpop.f32.mrb[5].mxu0 }
 0x357   : > { %v2234_v14 = vpop.f32.mrb[6].mxu0  ;;  %v2465_v54 = vpop.f32.mrb[8].mxu1 }
 0x358   : > { %v2239_v13 = vadd.f32 %v2234_v14, %v2145_v10  ;;  %v2308_v8 = vadd.f32 %v2301_v30, %v2238_v48  ;;  %v3038_v55 = vpop.f32.mrb[7].mxu0  ;;  %v3055_v57 = vpop.f32.mrb[9].mxu1 }
 0x359   : > { %v2468_v19 = vpop.f32.mrb[10].mxu1 }
 0x35a   : > { %v2309_v40 = vadd.f32 %v2304_v17, %v2239_v13  ;;  %v3056_v0 = vpop.f32.mrb[11].mxu1 }
 0x35d   : > { %v2392_v58 = vpop.f32.mrb[8].mxu0 }
 0x35e   : > { %v2399_v59 = vadd.f32 %v2392_v58, %v2308_v8  ;;  %v3049_v42 = vpop.f32.mrb[9].mxu0 }
 0x35f   : > { %v2395_v23 = vpop.f32.mrb[10].mxu0  ;;  %v2610_v62 = vpop.f32.mrb[12].mxu1 }
 0x360   : > { %v2400_v22 = vadd.f32 %v2395_v23, %v2309_v40  ;;  %v2472_v63 = vadd.f32 %v2465_v54, %v2399_v59  ;;  %v3050_v2 = vpop.f32.mrb[11].mxu0  ;;  %v3067_v3 = vpop.f32.mrb[13].mxu1 }
 0x361   : > { %v2613_v4 = vpop.f32.mrb[14].mxu1 }
 0x362   : > { %v2473_v5 = vadd.f32 %v2468_v19, %v2400_v22  ;;  %v3068_v6 = vpop.f32.mrb[15].mxu1 }
 0x365   : > { %v2527_v7 = vpop.f32.mrb[12].mxu0 }
 0x366   : > { %v2534_v9 = vadd.f32 %v2527_v7, %v2472_v63  ;;  %v3061_v24 = vpop.f32.mrb[13].mxu0 }
 0x367   : > { %v2530_v28 = vpop.f32.mrb[14].mxu0 }
 0x368   : > { %v2535_v31 = vadd.f32 %v2530_v28, %v2473_v5  ;;  %v2617_v18 = vadd.f32 %v2610_v62, %v2534_v9  ;;  %v3062_v34 = vpop.f32.mrb[15].mxu0 }
 0x36a   : > { %v2618_v35 = vadd.f32 %v2613_v4, %v2535_v31 }
 0x36d   : > { %v2675_v11 = vpop.f32.mrb[16].mxu0 }
 0x36e   : > { %v2682_v36 = vadd.f32 %v2675_v11, %v2617_v18  ;;  %v3073_v43 = vpop.f32.mrb[17].mxu0 }
 0x36f   : > { %v2678_v29 = vpop.f32.mrb[18].mxu0 }
 0x370   : > { %v2683_v39 = vadd.f32 %v2678_v29, %v2618_v35  ;;  %v3074_v26 = vpop.f32.mrb[19].mxu0  ;;  %v2691_v60 = vadd.f32 %v2882_v33, %v2682_v36 }
 0x372   : > { %2693 = vxpose.xlu0.b32.start [1/2] (short) (narrow) %v2691_v60, 24  ;;  %v2692_v44 = vadd.f32 %v2882_v33, %v2683_v39 }
 0x376   : > { %2694 = vxpose.xlu0.b32.end [2/2] (short) (narrow) %v2692_v44, 24 }
 0x3f2   : > { %v2709_v12 = vpop.trf.xlu0 }
 0x3f3   : > { %2725 = vst.msk [vmem:[%s3264_s15] sm:$0xff] %vm1135_vm4, %v2709_v12 }
 0x3f6   : > { %v2710_v38 = vpop.trf.xlu0 }
 0x3f7   : > { %2726 = vst.msk [vmem:[%s3264_s15 + $0x8] sm:$0xff] %vm1135_vm4, %v2710_v38 }
 0x3fa   : > { %v2711_v16 = vpop.trf.xlu0 }
 0x3fb   : > { %2728 = vst.msk [vmem:[%s3264_s15 + $0x10] sm:$0xf] %vm2727_vm0, %v2711_v16 }
 0x3fc PF: > { %s17_s24 = sadd.s32 1, %s3160_s24  }
 0x3fd   : > { %p14_p5 = scmp.ge.s32.totalorder %s17_s24, 4  }
 0x3ff   :  { %16 = sbr.rel (!%p14_p5) target bundleno = 1 (0x1), region = 105 }

</bundles_post_ra>
